<compile_context>
chip_gen: v7x
topology: tpu7x:2x2x1
jax: 0.10.0
libtpu: 0.0.40
codegen_flags: <defaults>
</compile_context>

<pallas_src>
import functools

import jax
import jax.numpy as jnp
from jax.experimental import pallas as pl
from jax.experimental.pallas import tpu as pltpu


def _round_up(x, m):
    return ((x + m - 1) // m) * m


@functools.lru_cache(maxsize=None)
def _vmem_limit():
    # v5e/v6e: 128 MiB physical VMEM -> raise the scoped limit.
    # v7x: 64 MiB physical -> stay <= 48 MiB (review guidance).
    try:
        cap = pltpu.get_tpu_info().vmem_capacity_bytes
    except Exception:
        cap = 0
    if cap >= 100 * 1024 * 1024:
        return 96 * 1024 * 1024
    return 48 * 1024 * 1024


def _act(y, alpha):
    """alpha baked at trace time: 0.0 -> ReLU, 1.0 -> identity, else PReLU."""
    if alpha == 1.0:
        return y
    if alpha == 0.0:
        return jnp.maximum(y, 0.0)
    return jnp.where(y > 0, y, alpha * y)


# --------------------------------------------------------------------------
# Fused direct-conv kernel:
#   out = act( (sum_t  X[rows + off_t, :] @ W_t) * bn_scale + bn_shift )
# X is the zero-padded, channel-padded, row-flattened NHWC input of one image;
# each tap t is a contiguous row window at static offset off_t.  MXU matmuls
# in bf16, f32 accumulation in a VMEM scratch, fused BN + activation epilogue,
# bf16 (or f32 for cout==1) output store.
# --------------------------------------------------------------------------
def _dconv_kernel(x_ref, w_ref, scale_ref, shift_ref, o_ref, acc_ref, *,
                  tap_offsets, cp, tm, num_m_tiles, alpha):
    if num_m_tiles == 1:
        m0 = 0                                           # fully static offsets
    else:
        m0 = pl.multiple_of(pl.program_id(2) * tm, 16)

    if len(tap_offsets) == 1:                            # 1x1 conv fast path
        a = x_ref[0, pl.ds(m0 + tap_offsets[0], tm), :].astype(jnp.bfloat16)
        y = jnp.dot(a, w_ref[...], preferred_element_type=jnp.float32)
    else:
        for t, off in enumerate(tap_offsets):
            a = x_ref[0, pl.ds(m0 + off, tm), :].astype(jnp.bfloat16)
            w = w_ref[pl.ds(t * cp, cp), :]
            part = jnp.dot(a, w, preferred_element_type=jnp.float32)
            if t == 0:
                acc_ref[...] = part
            else:
                acc_ref[...] += part
        y = acc_ref[...]

    y = y * scale_ref[...] + shift_ref[...]
    o_ref[0] = _act(y, alpha).astype(o_ref.dtype)


# --------------------------------------------------------------------------
# Conv2d (+BN +activation) wrapper.  stride is handled by the caller (the
# synthetic backbone subsamples its input); dilation/padding arbitrary.
# --------------------------------------------------------------------------
def conv2d(x, p, *, dilation=1, padding=0):
    if p["kind"] == "scalar":
        # 1x1 conv on a 1-channel map (ARM*_s0): plain elementwise affine.
        return _act(x * p["w"] + p["shift"], p["alpha"])

    kh, kw, cin, cout = p["kh"], p["kw"], p["cin"], p["cout"]
    cp_, np_, tn = p["Cp"], p["Np"], p["tn"]
    n, h, w, c = x.shape
    assert c == cin, (c, cin)
    d, pad = dilation, padding

    hp, wp = h + 2 * pad, w + 2 * pad
    ho, wo = hp - d * (kh - 1), wp - d * (kw - 1)
    mo = ho * wp                           # flattened output rows per image
    m_out = _round_up(mo, 16)
    if m_out > 512:
        tm = 512
        m_out = _round_up(m_out, tm)
    else:
        tm = m_out
    num_m_tiles = m_out // tm

    tap_offsets = tuple(i * d * wp + j * d for i in range(kh) for j in range(kw))
    max_off = tap_offsets[-1]
    r_need = max_off + m_out
    eh = max(0, -(-(r_need - hp * wp) // wp))       # extra zero rows at bottom

    # bf16 input only when all window starts are packed-tile aligned (1x1 convs).
    in_dtype = jnp.bfloat16 if all(o % 16 == 0 for o in tap_offsets) else jnp.float32
    xq = x.astype(in_dtype)
    if pad or eh or cp_ != c:
        # single pad: conv zero-padding + tail rows + channel alignment.
        xq = jnp.pad(xq, ((0, 0), (pad, pad + eh), (pad, pad), (0, cp_ - c)))
    r_tot = (hp + eh) * wp
    xf = xq.reshape(n, r_tot, cp_)

    out = pl.pallas_call(
        functools.partial(_dconv_kernel, tap_offsets=tap_offsets, cp=cp_,
                          tm=tm, num_m_tiles=num_m_tiles, alpha=p["alpha"]),
        out_shape=jax.ShapeDtypeStruct((n, m_out, np_), p["out_dtype"]),
        grid_spec=pltpu.PrefetchScalarGridSpec(
            num_scalar_prefetch=0,
            grid=(n, np_ // tn, num_m_tiles),
            in_specs=[
                pl.BlockSpec((1, r_tot, cp_), lambda b, j, m: (b, 0, 0)),
                pl.BlockSpec((kh * kw * cp_, tn), lambda b, j, m: (0, j)),
                pl.BlockSpec((1, tn), lambda b, j, m: (0, j)),
                pl.BlockSpec((1, tn), lambda b, j, m: (0, j)),
            ],
            out_specs=pl.BlockSpec((1, tm, tn), lambda b, j, m: (b, m, j)),
            scratch_shapes=[pltpu.VMEM((tm, tn), jnp.float32)],
        ),
        compiler_params=pltpu.CompilerParams(
            dimension_semantics=("parallel", "parallel", "parallel"),
            vmem_limit_bytes=_vmem_limit()),
    )(xf, p["w"], p["scale"], p["shift"])

    out = out[:, :mo, :cout].reshape(n, ho, wp, cout)
    if wo != wp:
        out = out[:, :, :wo, :]            # drop wrap-around columns
    return out


def upsample(x, size):
    """Bilinear, half-pixel centers (matches F.upsample align_corners=False)."""
    n, _, _, c = x.shape
    return jax.image.resize(x.astype(jnp.float32), (n, size[0], size[1], c),
                            method="bilinear")


# --------------------------------------------------------------------------
# Deterministic parameter construction (synthetic weights, no checkpoint).
# Weight transpose OIHW->(kh,kw,cin,cout), bias/BN folding, channel padding,
# bf16 cast: all ONCE here.
# --------------------------------------------------------------------------
def make_conv(key, cin, cout, k, bn=True, act="prelu"):
    k1, k2, k3, k4, k5, k6 = jax.random.split(key, 6)
    std = float(cin * k * k) ** -0.5
    w = std * jax.random.normal(k1, (cout, cin, k, k), jnp.float32)
    b = 0.1 * jax.random.normal(k2, (cout,), jnp.float32)
    alpha = {"prelu": 0.25, "relu": 0.0, None: 1.0}[act]
    if bn:
        gamma = 1.0 + 0.1 * jax.random.normal(k3, (cout,), jnp.float32)
        beta = 0.1 * jax.random.normal(k4, (cout,), jnp.float32)
        mean = 0.1 * jax.random.normal(k5, (cout,), jnp.float32)
        var = 1.0 + 0.1 * jnp.abs(jax.random.normal(k6, (cout,), jnp.float32))
        scale = gamma / jnp.sqrt(var + 1e-5)
        shift = beta - scale * mean + scale * b   # conv bias folded into BN shift
    else:
        scale = jnp.ones((cout,), jnp.float32)
        shift = b

    if cin == 1 and cout == 1 and k == 1:         # ARM*_s0
        return dict(kind="scalar", w=float(w[0, 0, 0, 0] * scale[0]),
                    shift=float(shift[0]), alpha=alpha, kh=k, kw=k,
                    cin=cin, cout=cout)

    cp_ = _round_up(cin, 128)
    np_ = _round_up(cout, 128)
    tn = 256 if np_ % 256 == 0 else 128
    if k * k * cp_ * tn * 2 > 8 * 1024 * 1024:    # keep W double-buffer modest (v7x)
        tn = 128

    wt = jnp.transpose(w, (2, 3, 1, 0))           # (kh, kw, cin, cout)
    wt = jnp.pad(wt, ((0, 0), (0, 0), (0, cp_ - cin), (0, np_ - cout)))
    wm = wt.reshape(k * k * cp_, np_).astype(jnp.bfloat16)
    scale_p = jnp.pad(scale.reshape(1, cout), ((0, 0), (0, np_ - cout)))
    shift_p = jnp.pad(shift.reshape(1, cout), ((0, 0), (0, np_ - cout)))
    out_dtype = jnp.bfloat16 if cout > 1 else jnp.float32
    return dict(kind="mxu", w=wm, scale=scale_p, shift=shift_p, alpha=alpha,
                kh=k, kw=k, cin=cin, cout=cout, Cp=cp_, Np=np_, tn=tn,
                out_dtype=out_dtype)


def init_params(key):
    keys = iter(jax.random.split(key, 64))
    nk = lambda: next(keys)
    p = {}
    # Synthetic backbone (see TODO(synk) at the top).
    p["l0"] = make_conv(nk(), 3, 64, 3, act="relu")
    p["l1"] = make_conv(nk(), 64, 256, 3, act="relu")
    p["l2"] = make_conv(nk(), 256, 512, 3, act="relu")
    p["l3"] = make_conv(nk(), 512, 1024, 3, act="relu")
    p["l4"] = make_conv(nk(), 1024, 2048, 3, act="relu")
    # _ASPP(2048): down_dim = 1024
    d = 1024
    p["aspp_c1"] = make_conv(nk(), 2048, d, 1)
    p["aspp_c2"] = make_conv(nk(), 2048, d, 3)
    p["aspp_c3"] = make_conv(nk(), 2048, d, 3)
    p["aspp_c4"] = make_conv(nk(), 2048, d, 3)
    p["aspp_c5"] = make_conv(nk(), 2048, d, 1)
    p["aspp_f1"] = make_conv(nk(), 5 * d, 2048, 1)
    p["aspp_f2"] = make_conv(nk(), 2048, 1, 1)

    def arm(cin, mid):
        return (
            make_conv(nk(), cin, mid, 3),                    # 3x3 + BN + PReLU
            make_conv(nk(), mid, 1, 3, bn=False, act=None),  # 3x3 -> 1 channel
            make_conv(nk(), 1, 1, 1, bn=False, act=None),    # ARM*_s0 1x1
        )

    p["arm5"] = arm(2048 + 1, 256)
    p["arm4"] = arm(1024 + 2, 256)
    p["arm3"] = arm(512 + 2, 256)
    p["arm2"] = arm(256 + 2, 256)
    p["arm1"] = arm(64 + 2, 64)
    return p


# --------------------------------------------------------------------------
# Model forward (eval mode: BN running stats, returns sigmoid(output1))
# --------------------------------------------------------------------------
def aspp_forward(x, p):
    c1 = conv2d(x, p["aspp_c1"])
    c2 = conv2d(x, p["aspp_c2"], dilation=2, padding=2)
    c3 = conv2d(x, p["aspp_c3"], dilation=4, padding=4)
    c4 = conv2d(x, p["aspp_c4"], dilation=6, padding=6)
    gp = jnp.mean(x.astype(jnp.float32), axis=(1, 2), keepdims=True)
    c5 = conv2d(gp, p["aspp_c5"])
    c5 = upsample(c5, x.shape[1:3]).astype(jnp.bfloat16)
    fused = jnp.concatenate([c1, c2, c3, c4, c5], axis=-1)
    f = conv2d(fused, p["aspp_f1"])
    return conv2d(f, p["aspp_f2"])                 # (N, H, W, 1) f32


def arm_forward(prm, feats):
    cat = jnp.concatenate([f.astype(jnp.bfloat16) for f in feats], axis=-1)
    r = conv2d(cat, prm[0], padding=1)
    r = conv2d(r, prm[1], padding=1)               # ARM*_r0 tail (1 channel)
    s = conv2d(r, prm[2])                          # ARM*_s0
    return r, s


def r2net_forward(p, x_nchw):
    x = jnp.transpose(x_nchw, (0, 2, 3, 1)).astype(jnp.float32)   # -> NHWC
    in_size = x.shape[1:3]

    def backbone(t, prm, stride):
        if stride > 1:
            t = t[:, ::stride, ::stride, :]        # synthetic downsampling
        return conv2d(t, prm, padding=1)

    l0 = backbone(x, p["l0"], 4)
    l1 = backbone(l0, p["l1"], 1)
    l2 = backbone(l1, p["l2"], 2)
    l3 = backbone(l2, p["l3"], 2)
    l4 = backbone(l3, p["l4"], 2)

    output0 = aspp_forward(l4, p)

    r5, s5 = arm_forward(p["arm5"], [output0, l4])
    output5 = s5 + output0

    sz3 = l3.shape[1:3]
    up5 = upsample(output5, sz3)
    r4, s4 = arm_forward(p["arm4"], [up5, upsample(r5, sz3), l3])
    output4 = up5 + s4

    sz2 = l2.shape[1:3]
    up4 = upsample(output4, sz2)
    r3, s3 = arm_forward(p["arm3"], [up4, upsample(r4, sz2), l2])
    output3 = up4 + s3

    sz1 = l1.shape[1:3]
    up3 = upsample(output3, sz1)
    r2, s2 = arm_forward(p["arm2"], [up3, upsample(r3, sz1), l1])
    output2 = up3 + s2

    sz0 = l0.shape[1:3]
    up2 = upsample(output2, sz0)
    r1, s1 = arm_forward(p["arm1"], [up2, upsample(r2, sz0), l0])
    output1 = up2 + s1
    output1 = upsample(output1, in_size)

    out = jax.nn.sigmoid(output1)                  # eval path of R2Net
    return jnp.transpose(out, (0, 3, 1, 2))        # back to NCHW


# --------------------------------------------------------------------------
if __name__ == "__main__":
    key = jax.random.PRNGKey(0)
    kx, kp = jax.random.split(key)
    x = jax.random.normal(kx, (1, 3, 64, 64), jnp.float32)   # NCHW, like PyTorch
    params = init_params(kp)

    out = r2net_forward(params, x)
    out = jax.block_until_ready(out)

    assert out.shape == (1, 1, 64, 64), out.shape
    assert bool(jnp.all(jnp.isfinite(out)))
    print("KERNEL_OK")
</pallas_src>

<mosaic_0001>
module attributes {stable_mosaic.version = 11 : i64} {
  func.func @_dconv_kernel(%arg0: i32, %arg1: i32, %arg2: i32, %arg3: memref<1x342x128xf32, #tpu.memory_space<vmem>>, %arg4: memref<1152x128xbf16, #tpu.memory_space<vmem>>, %arg5: memref<1x128xf32, #tpu.memory_space<vmem>>, %arg6: memref<1x128xf32, #tpu.memory_space<vmem>>, %arg7: memref<1x288x128xbf16, #tpu.memory_space<vmem>>, %arg8: memref<288x128xf32, #tpu.memory_space<vmem>>) attributes {dimension_semantics = [#tpu.dimension_semantics<parallel>, #tpu.dimension_semantics<parallel>, #tpu.dimension_semantics<parallel>], iteration_bounds = array<i64: 1, 1, 1>, scalar_prefetch = 0 : i64, scratch_operands = 1 : i64, tpu.core_type = #tpu.core_type<tc>, window_params = [{transform_indices = @transform_0, window_bounds = array<i64: 1, 342, 128>}, {transform_indices = @transform_1, window_bounds = array<i64: 1152, 128>}, {transform_indices = @transform_2, window_bounds = array<i64: 1, 128>}, {transform_indices = @transform_3, window_bounds = array<i64: 1, 128>}, {transform_indices = @transform_4, window_bounds = array<i64: 1, 288, 128>}]} {
    %c0 = arith.constant 0 : index
    %c0_0 = arith.constant 0 : index
    %c0_1 = arith.constant 0 : index
    %0 = vector.load %arg3[%c0, %c0_0, %c0_1] : memref<1x342x128xf32, #tpu.memory_space<vmem>>, vector<1x288x128xf32>
    %1 = vector.shape_cast %0 : vector<1x288x128xf32> to vector<288x128xf32>
    %2 = arith.truncf %1 : vector<288x128xf32> to vector<288x128xbf16>
    %c0_2 = arith.constant 0 : index
    %c0_3 = arith.constant 0 : index
    %3 = vector.load %arg4[%c0_2, %c0_3] : memref<1152x128xbf16, #tpu.memory_space<vmem>>, vector<128x128xbf16>
    %cst = arith.constant dense<0.000000e+00> : vector<288x128xf32>
    %4 = tpu.matmul %2, %3, %cst {dimension_numbers = #tpu.dot_dimension_numbers<[1], [0], [0], [1], [0, 0, 1, 1], [], []>} : vector<288x128xbf16>, vector<128x128xbf16>, vector<288x128xf32> -> vector<288x128xf32>
    %c0_4 = arith.constant 0 : index
    %c0_5 = arith.constant 0 : index
    %5 = vector.load %arg8[%c0_4, %c0_5] : memref<288x128xf32, #tpu.memory_space<vmem>>, vector<288x128xf32>
    tpu.vector_store %arg8[%c0_4, %c0_5], %4 {strides = array<i32>} : memref<288x128xf32, #tpu.memory_space<vmem>>, vector<288x128xf32>,
    %c0_6 = arith.constant 0 : index
    %c1 = arith.constant 1 : index
    %c0_7 = arith.constant 0 : index
    %6 = vector.load %arg3[%c0_6, %c1, %c0_7] : memref<1x342x128xf32, #tpu.memory_space<vmem>>, vector<1x288x128xf32>
    %7 = vector.shape_cast %6 : vector<1x288x128xf32> to vector<288x128xf32>
    %8 = arith.truncf %7 : vector<288x128xf32> to vector<288x128xbf16>
    %c128 = arith.constant 128 : index
    %c0_8 = arith.constant 0 : index
    %9 = vector.load %arg4[%c128, %c0_8] : memref<1152x128xbf16, #tpu.memory_space<vmem>>, vector<128x128xbf16>
    %cst_9 = arith.constant dense<0.000000e+00> : vector<288x128xf32>
    %10 = tpu.matmul %8, %9, %cst_9 {dimension_numbers = #tpu.dot_dimension_numbers<[1], [0], [0], [1], [0, 0, 1, 1], [], []>} : vector<288x128xbf16>, vector<128x128xbf16>, vector<288x128xf32> -> vector<288x128xf32>
    %c0_10 = arith.constant 0 : index
    %c0_11 = arith.constant 0 : index
    %11 = vector.load %arg8[%c0_10, %c0_11] : memref<288x128xf32, #tpu.memory_space<vmem>>, vector<288x128xf32>
    %12 = arith.addf %11, %10 : vector<288x128xf32>
    %c0_12 = arith.constant 0 : index
    %c0_13 = arith.constant 0 : index
    %13 = vector.load %arg8[%c0_12, %c0_13] : memref<288x128xf32, #tpu.memory_space<vmem>>, vector<288x128xf32>
    tpu.vector_store %arg8[%c0_12, %c0_13], %12 {strides = array<i32>} : memref<288x128xf32, #tpu.memory_space<vmem>>, vector<288x128xf32>,
    %c0_14 = arith.constant 0 : index
    %c2 = arith.constant 2 : index
    %c0_15 = arith.constant 0 : index
    %14 = vector.load %arg3[%c0_14, %c2, %c0_15] : memref<1x342x128xf32, #tpu.memory_space<vmem>>, vector<1x288x128xf32>
    %15 = vector.shape_cast %14 : vector<1x288x128xf32> to vector<288x128xf32>
    %16 = arith.truncf %15 : vector<288x128xf32> to vector<288x128xbf16>
    %c256 = arith.constant 256 : index
    %c0_16 = arith.constant 0 : index
    %17 = vector.load %arg4[%c256, %c0_16] : memref<1152x128xbf16, #tpu.memory_space<vmem>>, vector<128x128xbf16>
    %cst_17 = arith.constant dense<0.000000e+00> : vector<288x128xf32>
    %18 = tpu.matmul %16, %17, %cst_17 {dimension_numbers = #tpu.dot_dimension_numbers<[1], [0], [0], [1], [0, 0, 1, 1], [], []>} : vector<288x128xbf16>, vector<128x128xbf16>, vector<288x128xf32> -> vector<288x128xf32>
    %c0_18 = arith.constant 0 : index
    %c0_19 = arith.constant 0 : index
    %19 = vector.load %arg8[%c0_18, %c0_19] : memref<288x128xf32, #tpu.memory_space<vmem>>, vector<288x128xf32>
    %20 = arith.addf %19, %18 : vector<288x128xf32>
    %c0_20 = arith.constant 0 : index
    %c0_21 = arith.constant 0 : index
    %21 = vector.load %arg8[%c0_20, %c0_21] : memref<288x128xf32, #tpu.memory_space<vmem>>, vector<288x128xf32>
    tpu.vector_store %arg8[%c0_20, %c0_21], %20 {strides = array<i32>} : memref<288x128xf32, #tpu.memory_space<vmem>>, vector<288x128xf32>,
    %c0_22 = arith.constant 0 : index
    %c18 = arith.constant 18 : index
    %c0_23 = arith.constant 0 : index
    %22 = vector.load %arg3[%c0_22, %c18, %c0_23] : memref<1x342x128xf32, #tpu.memory_space<vmem>>, vector<1x288x128xf32>
    %23 = vector.shape_cast %22 : vector<1x288x128xf32> to vector<288x128xf32>
    %24 = arith.truncf %23 : vector<288x128xf32> to vector<288x128xbf16>
    %c384 = arith.constant 384 : index
    %c0_24 = arith.constant 0 : index
    %25 = vector.load %arg4[%c384, %c0_24] : memref<1152x128xbf16, #tpu.memory_space<vmem>>, vector<128x128xbf16>
    %cst_25 = arith.constant dense<0.000000e+00> : vector<288x128xf32>
    %26 = tpu.matmul %24, %25, %cst_25 {dimension_numbers = #tpu.dot_dimension_numbers<[1], [0], [0], [1], [0, 0, 1, 1], [], []>} : vector<288x128xbf16>, vector<128x128xbf16>, vector<288x128xf32> -> vector<288x128xf32>
    %c0_26 = arith.constant 0 : index
    %c0_27 = arith.constant 0 : index
    %27 = vector.load %arg8[%c0_26, %c0_27] : memref<288x128xf32, #tpu.memory_space<vmem>>, vector<288x128xf32>
    %28 = arith.addf %27, %26 : vector<288x128xf32>
    %c0_28 = arith.constant 0 : index
    %c0_29 = arith.constant 0 : index
    %29 = vector.load %arg8[%c0_28, %c0_29] : memref<288x128xf32, #tpu.memory_space<vmem>>, vector<288x128xf32>
    tpu.vector_store %arg8[%c0_28, %c0_29], %28 {strides = array<i32>} : memref<288x128xf32, #tpu.memory_space<vmem>>, vector<288x128xf32>,
    %c0_30 = arith.constant 0 : index
    %c19 = arith.constant 19 : index
    %c0_31 = arith.constant 0 : index
    %30 = vector.load %arg3[%c0_30, %c19, %c0_31] : memref<1x342x128xf32, #tpu.memory_space<vmem>>, vector<1x288x128xf32>
    %31 = vector.shape_cast %30 : vector<1x288x128xf32> to vector<288x128xf32>
    %32 = arith.truncf %31 : vector<288x128xf32> to vector<288x128xbf16>
    %c512 = arith.constant 512 : index
    %c0_32 = arith.constant 0 : index
    %33 = vector.load %arg4[%c512, %c0_32] : memref<1152x128xbf16, #tpu.memory_space<vmem>>, vector<128x128xbf16>
    %cst_33 = arith.constant dense<0.000000e+00> : vector<288x128xf32>
    %34 = tpu.matmul %32, %33, %cst_33 {dimension_numbers = #tpu.dot_dimension_numbers<[1], [0], [0], [1], [0, 0, 1, 1], [], []>} : vector<288x128xbf16>, vector<128x128xbf16>, vector<288x128xf32> -> vector<288x128xf32>
    %c0_34 = arith.constant 0 : index
    %c0_35 = arith.constant 0 : index
    %35 = vector.load %arg8[%c0_34, %c0_35] : memref<288x128xf32, #tpu.memory_space<vmem>>, vector<288x128xf32>
    %36 = arith.addf %35, %34 : vector<288x128xf32>
    %c0_36 = arith.constant 0 : index
    %c0_37 = arith.constant 0 : index
    %37 = vector.load %arg8[%c0_36, %c0_37] : memref<288x128xf32, #tpu.memory_space<vmem>>, vector<288x128xf32>
    tpu.vector_store %arg8[%c0_36, %c0_37], %36 {strides = array<i32>} : memref<288x128xf32, #tpu.memory_space<vmem>>, vector<288x128xf32>,
    %c0_38 = arith.constant 0 : index
    %c20 = arith.constant 20 : index
    %c0_39 = arith.constant 0 : index
    %38 = vector.load %arg3[%c0_38, %c20, %c0_39] : memref<1x342x128xf32, #tpu.memory_space<vmem>>, vector<1x288x128xf32>
    %39 = vector.shape_cast %38 : vector<1x288x128xf32> to vector<288x128xf32>
    %40 = arith.truncf %39 : vector<288x128xf32> to vector<288x128xbf16>
    %c640 = arith.constant 640 : index
    %c0_40 = arith.constant 0 : index
    %41 = vector.load %arg4[%c640, %c0_40] : memref<1152x128xbf16, #tpu.memory_space<vmem>>, vector<128x128xbf16>
    %cst_41 = arith.constant dense<0.000000e+00> : vector<288x128xf32>
    %42 = tpu.matmul %40, %41, %cst_41 {dimension_numbers = #tpu.dot_dimension_numbers<[1], [0], [0], [1], [0, 0, 1, 1], [], []>} : vector<288x128xbf16>, vector<128x128xbf16>, vector<288x128xf32> -> vector<288x128xf32>
    %c0_42 = arith.constant 0 : index
    %c0_43 = arith.constant 0 : index
    %43 = vector.load %arg8[%c0_42, %c0_43] : memref<288x128xf32, #tpu.memory_space<vmem>>, vector<288x128xf32>
    %44 = arith.addf %43, %42 : vector<288x128xf32>
    %c0_44 = arith.constant 0 : index
    %c0_45 = arith.constant 0 : index
    %45 = vector.load %arg8[%c0_44, %c0_45] : memref<288x128xf32, #tpu.memory_space<vmem>>, vector<288x128xf32>
    tpu.vector_store %arg8[%c0_44, %c0_45], %44 {strides = array<i32>} : memref<288x128xf32, #tpu.memory_space<vmem>>, vector<288x128xf32>,
    %c0_46 = arith.constant 0 : index
    %c36 = arith.constant 36 : index
    %c0_47 = arith.constant 0 : index
    %46 = vector.load %arg3[%c0_46, %c36, %c0_47] : memref<1x342x128xf32, #tpu.memory_space<vmem>>, vector<1x288x128xf32>
    %47 = vector.shape_cast %46 : vector<1x288x128xf32> to vector<288x128xf32>
    %48 = arith.truncf %47 : vector<288x128xf32> to vector<288x128xbf16>
    %c768 = arith.constant 768 : index
    %c0_48 = arith.constant 0 : index
    %49 = vector.load %arg4[%c768, %c0_48] : memref<1152x128xbf16, #tpu.memory_space<vmem>>, vector<128x128xbf16>
    %cst_49 = arith.constant dense<0.000000e+00> : vector<288x128xf32>
    %50 = tpu.matmul %48, %49, %cst_49 {dimension_numbers = #tpu.dot_dimension_numbers<[1], [0], [0], [1], [0, 0, 1, 1], [], []>} : vector<288x128xbf16>, vector<128x128xbf16>, vector<288x128xf32> -> vector<288x128xf32>
    %c0_50 = arith.constant 0 : index
    %c0_51 = arith.constant 0 : index
    %51 = vector.load %arg8[%c0_50, %c0_51] : memref<288x128xf32, #tpu.memory_space<vmem>>, vector<288x128xf32>
    %52 = arith.addf %51, %50 : vector<288x128xf32>
    %c0_52 = arith.constant 0 : index
    %c0_53 = arith.constant 0 : index
    %53 = vector.load %arg8[%c0_52, %c0_53] : memref<288x128xf32, #tpu.memory_space<vmem>>, vector<288x128xf32>
    tpu.vector_store %arg8[%c0_52, %c0_53], %52 {strides = array<i32>} : memref<288x128xf32, #tpu.memory_space<vmem>>, vector<288x128xf32>,
    %c0_54 = arith.constant 0 : index
    %c37 = arith.constant 37 : index
    %c0_55 = arith.constant 0 : index
    %54 = vector.load %arg3[%c0_54, %c37, %c0_55] : memref<1x342x128xf32, #tpu.memory_space<vmem>>, vector<1x288x128xf32>
    %55 = vector.shape_cast %54 : vector<1x288x128xf32> to vector<288x128xf32>
    %56 = arith.truncf %55 : vector<288x128xf32> to vector<288x128xbf16>
    %c896 = arith.constant 896 : index
    %c0_56 = arith.constant 0 : index
    %57 = vector.load %arg4[%c896, %c0_56] : memref<1152x128xbf16, #tpu.memory_space<vmem>>, vector<128x128xbf16>
    %cst_57 = arith.constant dense<0.000000e+00> : vector<288x128xf32>
    %58 = tpu.matmul %56, %57, %cst_57 {dimension_numbers = #tpu.dot_dimension_numbers<[1], [0], [0], [1], [0, 0, 1, 1], [], []>} : vector<288x128xbf16>, vector<128x128xbf16>, vector<288x128xf32> -> vector<288x128xf32>
    %c0_58 = arith.constant 0 : index
    %c0_59 = arith.constant 0 : index
    %59 = vector.load %arg8[%c0_58, %c0_59] : memref<288x128xf32, #tpu.memory_space<vmem>>, vector<288x128xf32>
    %60 = arith.addf %59, %58 : vector<288x128xf32>
    %c0_60 = arith.constant 0 : index
    %c0_61 = arith.constant 0 : index
    %61 = vector.load %arg8[%c0_60, %c0_61] : memref<288x128xf32, #tpu.memory_space<vmem>>, vector<288x128xf32>
    tpu.vector_store %arg8[%c0_60, %c0_61], %60 {strides = array<i32>} : memref<288x128xf32, #tpu.memory_space<vmem>>, vector<288x128xf32>,
    %c0_62 = arith.constant 0 : index
    %c38 = arith.constant 38 : index
    %c0_63 = arith.constant 0 : index
    %62 = vector.load %arg3[%c0_62, %c38, %c0_63] : memref<1x342x128xf32, #tpu.memory_space<vmem>>, vector<1x288x128xf32>
    %63 = vector.shape_cast %62 : vector<1x288x128xf32> to vector<288x128xf32>
    %64 = arith.truncf %63 : vector<288x128xf32> to vector<288x128xbf16>
    %c1024 = arith.constant 1024 : index
    %c0_64 = arith.constant 0 : index
    %65 = vector.load %arg4[%c1024, %c0_64] : memref<1152x128xbf16, #tpu.memory_space<vmem>>, vector<128x128xbf16>
    %cst_65 = arith.constant dense<0.000000e+00> : vector<288x128xf32>
    %66 = tpu.matmul %64, %65, %cst_65 {dimension_numbers = #tpu.dot_dimension_numbers<[1], [0], [0], [1], [0, 0, 1, 1], [], []>} : vector<288x128xbf16>, vector<128x128xbf16>, vector<288x128xf32> -> vector<288x128xf32>
    %c0_66 = arith.constant 0 : index
    %c0_67 = arith.constant 0 : index
    %67 = vector.load %arg8[%c0_66, %c0_67] : memref<288x128xf32, #tpu.memory_space<vmem>>, vector<288x128xf32>
    %68 = arith.addf %67, %66 : vector<288x128xf32>
    %c0_68 = arith.constant 0 : index
    %c0_69 = arith.constant 0 : index
    %69 = vector.load %arg8[%c0_68, %c0_69] : memref<288x128xf32, #tpu.memory_space<vmem>>, vector<288x128xf32>
    tpu.vector_store %arg8[%c0_68, %c0_69], %68 {strides = array<i32>} : memref<288x128xf32, #tpu.memory_space<vmem>>, vector<288x128xf32>,
    %c0_70 = arith.constant 0 : index
    %c0_71 = arith.constant 0 : index
    %70 = vector.load %arg8[%c0_70, %c0_71] : memref<288x128xf32, #tpu.memory_space<vmem>>, vector<288x128xf32>
    %c0_72 = arith.constant 0 : index
    %c0_73 = arith.constant 0 : index
    %71 = vector.load %arg5[%c0_72, %c0_73] : memref<1x128xf32, #tpu.memory_space<vmem>>, vector<1x128xf32>
    %72 = vector.broadcast %71 : vector<1x128xf32> to vector<288x128xf32>
    %73 = arith.mulf %70, %72 : vector<288x128xf32>
    %c0_74 = arith.constant 0 : index
    %c0_75 = arith.constant 0 : index
    %74 = vector.load %arg6[%c0_74, %c0_75] : memref<1x128xf32, #tpu.memory_space<vmem>>, vector<1x128xf32>
    %75 = vector.broadcast %74 : vector<1x128xf32> to vector<288x128xf32>
    %76 = arith.addf %73, %75 : vector<288x128xf32>
    %cst_76 = arith.constant 0.000000e+00 : f32
    %77 = vector.broadcast %cst_76 : f32 to vector<288x128xf32>
    %78 = arith.maximumf %76, %77 : vector<288x128xf32>
    %79 = arith.truncf %78 : vector<288x128xf32> to vector<288x128xbf16>
    %c0_77 = arith.constant 0 : index
    %c0_78 = arith.constant 0 : index
    %c0_79 = arith.constant 0 : index
    %80 = vector.load %arg7[%c0_77, %c0_78, %c0_79] : memref<1x288x128xbf16, #tpu.memory_space<vmem>>, vector<1x288x128xbf16>
    %81 = vector.shape_cast %80 : vector<1x288x128xbf16> to vector<288x128xbf16>
    %82 = vector.shape_cast %79 : vector<288x128xbf16> to vector<1x288x128xbf16>
    tpu.vector_store %arg7[%c0_77, %c0_78, %c0_79], %82 {strides = array<i32>} : memref<1x288x128xbf16, #tpu.memory_space<vmem>>, vector<1x288x128xbf16>,
    return
  }
  func.func @transform_0(%arg0: i32, %arg1: i32, %arg2: i32) -> (i32, i32, i32) {
    %c0_i32 = arith.constant 0 : i32
    %c0_i32_0 = arith.constant 0 : i32
    %c0_i32_1 = arith.constant 0 : i32
    return %arg0, %c0_i32, %c0_i32_0 : i32, i32, i32
  }
  func.func @transform_1(%arg0: i32, %arg1: i32, %arg2: i32) -> (i32, i32) {
    %c0_i32 = arith.constant 0 : i32
    %c0_i32_0 = arith.constant 0 : i32
    return %c0_i32, %arg1 : i32, i32
  }
  func.func @transform_2(%arg0: i32, %arg1: i32, %arg2: i32) -> (i32, i32) {
    %c0_i32 = arith.constant 0 : i32
    %c0_i32_0 = arith.constant 0 : i32
    return %c0_i32, %arg1 : i32, i32
  }
  func.func @transform_3(%arg0: i32, %arg1: i32, %arg2: i32) -> (i32, i32) {
    %c0_i32 = arith.constant 0 : i32
    %c0_i32_0 = arith.constant 0 : i32
    return %c0_i32, %arg1 : i32, i32
  }
  func.func @transform_4(%arg0: i32, %arg1: i32, %arg2: i32) -> (i32, i32, i32) {
    %c0_i32 = arith.constant 0 : i32
    return %arg0, %arg2, %arg1 : i32, i32, i32
  }
}

</mosaic_0001>

<bundles_post_ra>
// kernel: tpu_custom_call.1
= control target key start
LH: loop header
LB: loop body
LE: loop exit
PB: predicated region body
PF: predicated region fallthrough
CT: control target
= control target key end

     0   :  { %s6592_s0 = inlined_call_operand.vmem [shape: f32[1,342,128], index: 0, kind: input, shape index: {}]   ;;  %s6593_s1 = inlined_call_operand.vmem [shape: bf16[1152,128], index: 1, kind: input, shape index: {}]   ;;  %s6594_s2 = inlined_call_operand.vmem [shape: f32[1,128], index: 2, kind: input, shape index: {}]   ;;  %s6595_s3 = inlined_call_operand.vmem [shape: f32[1,128], index: 3, kind: input, shape index: {}]   ;;  %s6596_s4 = inlined_call_operand.hbm [shape: bf16[1,288,128], index: 4, kind: output, shape index: {}]  }
   0x1   :  { %v5190_v0 = vld [vmem:[%s6593_s1] sm:$0xff]   ;;  %v5192_v2 = vld [vmem:[%s6593_s1 + $0x8] sm:$0xff]   ;;  %v5194_v4 = vld [vmem:[%s6593_s1 + $0x10] sm:$0xff]  }
   0x2   :  { %v5191_v1 = vld [vmem:[%s6593_s1 + $0x100] sm:$0xff]   ;;  %4415 = vmatprep.subr.bf16.mxu1 %v5190_v0  ;;  %v5193_v3 = vld [vmem:[%s6593_s1 + $0x108] sm:$0xff]   ;;  %v5195_v5 = vld [vmem:[%s6593_s1 + $0x110] sm:$0xff]  }
   0x3   :  { %4623 = vmatprep.subr.bf16.mxu0 %v5191_v1  ;;  %4416 = vmatpush3.bf16.msra.mxu1 %v5190_v0  ;;  %v5196_v6 = vld [vmem:[%s6593_s1 + $0x18] sm:$0xff]   ;;  %v5198_v8 = vld [vmem:[%s6593_s1 + $0x20] sm:$0xff]   ;;  %v5200_v10 = vld [vmem:[%s6593_s1 + $0x28] sm:$0xff]  }
   0x4   :  { %4624 = vmatpush3.bf16.msra.mxu0 %v5191_v1  ;;  %4417 = vmatprep.subr.bf16.mxu1 %v5192_v2  ;;  %v5197_v7 = vld [vmem:[%s6593_s1 + $0x118] sm:$0xff]   ;;  %v5199_v9 = vld [vmem:[%s6593_s1 + $0x120] sm:$0xff]   ;;  %v20_v12 = vld [vmem:[%s6592_s0 + $0x8] sm:$0xff] }
   0x5   :  { %4625 = vmatprep.subr.bf16.mxu0 %v5193_v3  ;;  %v19_v11 = vld [vmem:[%s6592_s0] sm:$0xff]  ;;  %v1559_v13 = vld [vmem:[%s6592_s0 + $0x13] sm:$0xff]  ;;  %v5201_v14 = vld [vmem:[%s6593_s1 + $0x128] sm:$0xff]  }
   0x6   :  { %v55_v15 = vpack.c.bf16 %v20_v12, %v19_v11  ;;  %v1560_v16 = vld [vmem:[%s6592_s0 + $0x1b] sm:$0xff]  ;;  %v5202_v18 = vld [vmem:[%s6593_s1 + $0x30] sm:$0xff]   ;;  %v1561_v25 = vld [vmem:[%s6592_s0 + $0x23] sm:$0xff] }
   0x7   :  { %4418 = vmatpush3.bf16.msra.mxu1 %v5192_v2  ;;  %v1595_v17 = vpack.c.bf16 %v1560_v16, %v1559_v13  ;;  %v5203_v19 = vld [vmem:[%s6593_s1 + $0x130] sm:$0xff]   ;;  %v5204_v20 = vld [vmem:[%s6593_s1 + $0x38] sm:$0xff]   ;;  %v5206_v24 = vld [vmem:[%s6593_s1 + $0x40] sm:$0xff]  }
   0x8   :  { %4626 = vmatpush3.bf16.msra.mxu0 %v5193_v3  ;;  %4419 = vmatprep.subr.bf16.mxu1 %v5194_v4  ;;  %v5205_v21 = vld [vmem:[%s6593_s1 + $0x138] sm:$0xff]   ;;  %v21_v22 = vld [vmem:[%s6592_s0 + $0x10] sm:$0xff]  ;;  %v5207_v27 = vld [vmem:[%s6593_s1 + $0x140] sm:$0xff]  }
   0x9   :  { %4627 = vmatprep.subr.bf16.mxu0 %v5195_v5  ;;  %4431 = vmatprep.mubr.bf16.mxu1 %v55_v15  ;;  %v22_v23 = vld [vmem:[%s6592_s0 + $0x18] sm:$0xff]  ;;  %v1562_v26 = vld [vmem:[%s6592_s0 + $0x2b] sm:$0xff]  ;;  %v23_v28 = vld [vmem:[%s6592_s0 + $0x20] sm:$0xff] }
   0xa   :  { %4639 = vmatprep.mubr.bf16.mxu0 %v1595_v17  ;;  %v24_v29 = vld [vmem:[%s6592_s0 + $0x28] sm:$0xff]  ;;  %v1563_v30 = vld [vmem:[%s6592_s0 + $0x33] sm:$0xff]  ;;  %v56_v31 = vpack.c.bf16 %v22_v23, %v21_v22  ;;  %v1564_v32 = vld [vmem:[%s6592_s0 + $0x3b] sm:$0xff]  ;;  %v1596_v33 = vpack.c.bf16 %v1562_v26, %v1561_v25 }
   0xb   :  { %4420 = vmatpush3.bf16.msra.mxu1 %v5194_v4  ;;  %v57_v34 = vpack.c.bf16 %v24_v29, %v23_v28  ;;  %v5208_v35 = vld [vmem:[%s6593_s1 + $0x148] sm:$0xff]   ;;  %v1597_v36 = vpack.c.bf16 %v1564_v32, %v1563_v30  ;;  %v25_v37 = vld [vmem:[%s6592_s0 + $0x30] sm:$0xff]  ;;  %v26_v38 = vld [vmem:[%s6592_s0 + $0x38] sm:$0xff] }
   0xc   :  { %4628 = vmatpush3.bf16.msra.mxu0 %v5195_v5  ;;  %4421 = vmatprep.subr.bf16.mxu1 %v5196_v6  ;;  %v1565_v39 = vld [vmem:[%s6592_s0 + $0x43] sm:$0xff]  ;;  %v1566_v40 = vld [vmem:[%s6592_s0 + $0x4b] sm:$0xff]  ;;  %v1567_v45 = vld [vmem:[%s6592_s0 + $0x53] sm:$0xff]  ;;  %v58_v48 = vpack.c.bf16 %v26_v38, %v25_v37 }
   0xd   :  { %4629 = vmatprep.subr.bf16.mxu0 %v5197_v7  ;;  %v5210_v41 = vld [vmem:[%s6593_s1 + $0x48] sm:$0xff]   ;;  %v27_v42 = vld [vmem:[%s6592_s0 + $0x40] sm:$0xff]  ;;  %v5209_v43 = vld [vmem:[%s6593_s1 + $0x150] sm:$0xff]   ;;  %v1598_v49 = vpack.c.bf16 %v1566_v40, %v1565_v39 }
   0xe   :  { %v28_v44 = vld [vmem:[%s6592_s0 + $0x48] sm:$0xff]  ;;  %v5213_v46 = vld [vmem:[%s6593_s1 + $0x50] sm:$0xff]   ;;  %v1568_v47 = vld [vmem:[%s6592_s0 + $0x5b] sm:$0xff] }
   0xf   :  { %4422 = vmatpush3.bf16.msra.mxu1 %v5196_v6  ;;  %v59_v50 = vpack.c.bf16 %v28_v44, %v27_v42  ;;  %v1599_v51 = vpack.c.bf16 %v1568_v47, %v1567_v45  ;;  %v5211_v52 = vld [vmem:[%s6593_s1 + $0x158] sm:$0xff]   ;;  %v29_v53 = vld [vmem:[%s6592_s0 + $0x50] sm:$0xff]  ;;  %v1569_v56 = vld [vmem:[%s6592_s0 + $0x63] sm:$0xff] }
  0x10   :  { %4630 = vmatpush3.bf16.msra.mxu0 %v5197_v7  ;;  %4423 = vmatprep.subr.bf16.mxu1 %v5198_v8  ;;  %v30_v54 = vld [vmem:[%s6592_s0 + $0x58] sm:$0xff]  ;;  %v1570_v57 = vld [vmem:[%s6592_s0 + $0x6b] sm:$0xff]  ;;  %v5212_v58 = vld [vmem:[%s6593_s1 + $0x160] sm:$0xff]  }
  0x11   :  { %4631 = vmatprep.subr.bf16.mxu0 %v5199_v9  ;;  %v5216_v55 = vld [vmem:[%s6593_s1 + $0x58] sm:$0xff]   ;;  %v31_v59 = vld [vmem:[%s6592_s0 + $0x60] sm:$0xff]  ;;  %v32_v60 = vld [vmem:[%s6592_s0 + $0x68] sm:$0xff]  ;;  %v60_v63 = vpack.c.bf16 %v30_v54, %v29_v53  ;;  %v1600_v1 = vpack.c.bf16 %v1570_v57, %v1569_v56 }
  0x12   :  { %v1571_v61 = vld [vmem:[%s6592_s0 + $0x73] sm:$0xff]  ;;  %v1572_v62 = vld [vmem:[%s6592_s0 + $0x7b] sm:$0xff]  ;;  %v61_v2 = vpack.c.bf16 %v32_v60, %v31_v59  ;;  %v5214_v4 = vld [vmem:[%s6593_s1 + $0x168] sm:$0xff]  }
  0x13   :  { %4424 = vmatpush3.bf16.msra.mxu1 %v5198_v8  ;;  %v5218_v0 = vld [vmem:[%s6593_s1 + $0x60] sm:$0xff]   ;;  %v1601_v3 = vpack.c.bf16 %v1572_v62, %v1571_v61  ;;  %v33_v5 = vld [vmem:[%s6592_s0 + $0x70] sm:$0xff]  ;;  %v5220_v6 = vld [vmem:[%s6593_s1 + $0x68] sm:$0xff]  }
  0x14   :  { %4632 = vmatpush3.bf16.msra.mxu0 %v5199_v9  ;;  %4425 = vmatprep.subr.bf16.mxu1 %v5200_v10  ;;  %v34_v7 = vld [vmem:[%s6592_s0 + $0x78] sm:$0xff]  ;;  %v1573_v8 = vld [vmem:[%s6592_s0 + $0x83] sm:$0xff]  ;;  %v1574_v9 = vld [vmem:[%s6592_s0 + $0x8b] sm:$0xff] }
  0x15   :  { %4633 = vmatprep.subr.bf16.mxu0 %v5201_v14  ;;  %v36_v11 = vld [vmem:[%s6592_s0 + $0x88] sm:$0xff]  ;;  %v5215_v12 = vld [vmem:[%s6593_s1 + $0x170] sm:$0xff]   ;;  %v62_v15 = vpack.c.bf16 %v34_v7, %v33_v5  ;;  %v1602_v17 = vpack.c.bf16 %v1574_v9, %v1573_v8  ;;  %v38_v22 = vld [vmem:[%s6592_s0 + $0x98] sm:$0xff] }
  0x16   :  { %v1962_v13 = vld [vmem:[%s6592_s0 + $0x14] sm:$0xff]  ;;  %v1965_v25 = vld [vmem:[%s6592_s0 + $0x2c] sm:$0xff]  ;;  %v39_v26 = vld [vmem:[%s6592_s0 + $0xa0] sm:$0xff] }
  0x17   :  { %4426 = vmatpush3.bf16.msra.mxu1 %v5200_v10  ;;  %v35_v10 = vld [vmem:[%s6592_s0 + $0x80] sm:$0xff]  ;;  %v5222_v16 = vld [vmem:[%s6593_s1 + $0x70] sm:$0xff]   ;;  %v5224_v23 = vld [vmem:[%s6593_s1 + $0x78] sm:$0xff]  }
  0x18   :  { %4634 = vmatpush3.bf16.msra.mxu0 %v5201_v14  ;;  %4427 = vmatprep.subr.bf16.mxu1 %v5202_v18  ;;  %v1963_v14 = vld [vmem:[%s6592_s0 + $0x1c] sm:$0xff]  ;;  %v1966_v28 = vld [vmem:[%s6592_s0 + $0x34] sm:$0xff]  ;;  %v5221_v37 = vld [vmem:[%s6593_s1 + $0x188] sm:$0xff]  }
  0x19   :  { %4635 = vmatprep.subr.bf16.mxu0 %v5203_v19  ;;  %v1967_v29 = vld [vmem:[%s6592_s0 + $0x3c] sm:$0xff]  ;;  %v1968_v39 = vld [vmem:[%s6592_s0 + $0x44] sm:$0xff]  ;;  %v1969_v40 = vld [vmem:[%s6592_s0 + $0x4c] sm:$0xff] }
  0x1a   :  { %v5219_v30 = vld [vmem:[%s6593_s1 + $0x180] sm:$0xff]   ;;  %v42_v38 = vld [vmem:[%s6592_s0 + $0xb8] sm:$0xff]  ;;  %v44_v42 = vld [vmem:[%s6592_s0 + $0xc8] sm:$0xff]  ;;  %v5595_v47 = vpack.c.bf16 %v1969_v40, %v1968_v39 }
  0x1b   :  { %4428 = vmatpush3.bf16.msra.mxu1 %v5202_v18  ;;  %v63_v18 = vpack.c.bf16 %v36_v11, %v35_v10  ;;  %v5556_v32 = vld [vmem:[%s6593_s1 + $0x80] sm:$0xff]   ;;  %v5223_v45 = vld [vmem:[%s6593_s1 + $0x190] sm:$0xff]   ;;  %v48_v56 = vld [vmem:[%s6592_s0 + $0xe8] sm:$0xff] }
  0x1c   :  { %4636 = vmatpush3.bf16.msra.mxu0 %v5203_v19  ;;  %4429 = vmatprep.subr.bf16.mxu1 %v5204_v20  ;;  %v1998_v19 = vpack.c.bf16 %v1963_v14, %v1962_v13  ;;  %v1971_v44 = vld [vmem:[%s6592_s0 + $0x5c] sm:$0xff]  ;;  %v1972_v53 = vld [vmem:[%s6592_s0 + $0x64] sm:$0xff]  ;;  %v1973_v54 = vld [vmem:[%s6592_s0 + $0x6c] sm:$0xff] }
  0x1d   :  { %4637 = vmatprep.subr.bf16.mxu0 %v5205_v21  ;;  %v1974_v57 = vld [vmem:[%s6592_s0 + $0x74] sm:$0xff]  ;;  %v5227_v59 = vld [vmem:[%s6593_s1 + $0x1a0] sm:$0xff]   ;;  %v5631_v61 = vpack.c.bf16 %v1973_v54, %v1972_v53 }
  0x1e   :  { %v51_v5 = vld [vmem:[%s6592_s0 + $0x100] sm:$0xff]  ;;  %v1978_v7 = vld [vmem:[%s6592_s0 + $0x94] sm:$0xff] }
  0x1f   :  { %4430 = vmatpush3.bf16.msra.mxu1 %v5204_v20  ;;  %v5217_v20 = vld [vmem:[%s6593_s1 + $0x178] sm:$0xff]   ;;  %v5231_v9 = vld [vmem:[%s6593_s1 + $0x1b0] sm:$0xff]  }
  0x20   :  { %4638 = vmatpush3.bf16.msra.mxu0 %v5205_v21  ;;  %4467 = vmatprep.subr.bf16.mxu1 %v5206_v24  ;;  %v37_v21 = vld [vmem:[%s6592_s0 + $0x90] sm:$0xff]  ;;  %v1979_v8 = vld [vmem:[%s6592_s0 + $0x9c] sm:$0xff] }
  0x21   :  { %4675 = vmatprep.subr.bf16.mxu0 %v5207_v27  ;;  %v5669_v13 = vpack.c.bf16 %v1979_v8, %v1978_v7  ;;  %v53_v14 = vld [vmem:[%s6592_s0 + $0x110] sm:$0xff]  ;;  %v1991_v53 = vld [vmem:[%s6592_s0 + $0xfc] sm:$0xff] }
  0x22   :  { %4432 = vmatmul.mubr.bf16.vlgmr.msra.gmra.mrb[0].mxu1 %v56_v31  ;;  %v64_v31 = vpack.c.bf16 %v38_v22, %v37_v21  ;;  %v1982_v21 = vld [vmem:[%s6592_s0 + $0xb4] sm:$0xff]  ;;  %v1983_v22 = vld [vmem:[%s6592_s0 + $0xbc] sm:$0xff] }
  0x23   :  { %4640 = vmatmul.mubr.bf16.vlgmr.msra.gmra.mrb[0].mxu0 %v1596_v33  ;;  %4468 = vmatpush3.bf16.msra.mxu1 %v5206_v24  ;;  %v1964_v24 = vld [vmem:[%s6592_s0 + $0x24] sm:$0xff] }
  0x24   :  { %4676 = vmatpush3.bf16.msra.mxu0 %v5207_v27  ;;  %4435 = vmatprep.mubr.bf16.mxu1 %v57_v34  ;;  %v40_v27 = vld [vmem:[%s6592_s0 + $0xa8] sm:$0xff]  ;;  %v5558_v33 = vpack.c.bf16 %v1965_v25, %v1964_v24 }
  0x25   :  { %4677 = vmatprep.subr.bf16.mxu0 %v5208_v35  ;;  %4643 = vmatprep.mubr.bf16.mxu0 %v1597_v36  ;;  %v65_v34 = vpack.c.bf16 %v40_v27, %v39_v26  ;;  %v41_v36 = vld [vmem:[%s6592_s0 + $0xb0] sm:$0xff]  ;;  %v5707_v27 = vpack.c.bf16 %v1983_v22, %v1982_v21 }
  0x26   :  { %4469 = vmatprep.subr.bf16.mxu1 %v5210_v41 }
  0x27   :  { %4470 = vmatpush3.bf16.msra.mxu1 %v5210_v41  ;;  %v43_v41 = vld [vmem:[%s6592_s0 + $0xc0] sm:$0xff] }
  0x28   :  { %4678 = vmatpush3.bf16.msra.mxu0 %v5208_v35  ;;  %4471 = vmatprep.subr.bf16.mxu1 %v5213_v46  ;;  %v5560_v35 = vpack.c.bf16 %v1967_v29, %v1966_v28  ;;  %v352_v28 = vld [vmem:[%s6592_s0 + $0x11] sm:$0xff]  ;;  %v353_v29 = vld [vmem:[%s6592_s0 + $0x19] sm:$0xff] }
  0x29   :  { %4679 = vmatprep.subr.bf16.mxu0 %v5209_v43  ;;  %v387_v39 = vpack.c.bf16 %v353_v29, %v352_v28  ;;  %v369_v28 = vld [vmem:[%s6592_s0 + $0x99] sm:$0xff]  ;;  %v370_v29 = vld [vmem:[%s6592_s0 + $0xa1] sm:$0xff] }
  0x2a   :  { %4436 = vmatmul.mubr.bf16.gmra.mrb[4].mxu1 %v58_v48  ;;  %v67_v48 = vpack.c.bf16 %v44_v42, %v43_v41 }
  0x2b   :  { %4644 = vmatmul.mubr.bf16.gmra.mrb[4].mxu0 %v1598_v49  ;;  %4439 = vmatprep.mubr.bf16.mxu1 %v59_v50  ;;  %v5225_v50 = vld [vmem:[%s6593_s1 + $0x198] sm:$0xff]  }
  0x2c   :  { %4680 = vmatpush3.bf16.msra.mxu0 %v5209_v43  ;;  %4647 = vmatprep.mubr.bf16.mxu0 %v1599_v51  ;;  %v1970_v43 = vld [vmem:[%s6592_s0 + $0x54] sm:$0xff] }
  0x2d   :  { %4681 = vmatprep.subr.bf16.mxu0 %v5211_v52  ;;  %4472 = vmatpush3.bf16.msra.mxu1 %v5213_v46  ;;  %v66_v46 = vpack.c.bf16 %v42_v38, %v41_v36  ;;  %v5597_v49 = vpack.c.bf16 %v1971_v44, %v1970_v43  ;;  %v45_v51 = vld [vmem:[%s6592_s0 + $0xd0] sm:$0xff]  ;;  %v1987_v38 = vld [vmem:[%s6592_s0 + $0xdc] sm:$0xff]  ;;  %v5228_v43 = vld [vmem:[%s6593_s1 + $0x88] sm:$0xff]  }
  0x2e   :  { %4473 = vmatprep.subr.bf16.mxu1 %v5216_v55  ;;  %v355_v36 = vld [vmem:[%s6592_s0 + $0x29] sm:$0xff]  ;;  %v356_v44 = vld [vmem:[%s6592_s0 + $0x31] sm:$0xff] }
  0x30   :  { %4682 = vmatpush3.bf16.msra.mxu0 %v5211_v52  ;;  %v46_v52 = vld [vmem:[%s6592_s0 + $0xd8] sm:$0xff] }
  0x31   :  { %4683 = vmatprep.subr.bf16.mxu0 %v5212_v58  ;;  %4474 = vmatpush3.bf16.msra.mxu1 %v5216_v55  ;;  %v47_v55 = vld [vmem:[%s6592_s0 + $0xe0] sm:$0xff]  ;;  %v68_v60 = vpack.c.bf16 %v46_v52, %v45_v51  ;;  %v5230_v51 = vld [vmem:[%s6593_s1 + $0x90] sm:$0xff]  }
  0x32   :  { %4440 = vmatmul.mubr.bf16.gmra.mrb[8].mxu1 %v60_v63  ;;  %4475 = vmatprep.subr.bf16.mxu1 %v5218_v0  ;;  %v69_v62 = vpack.c.bf16 %v48_v56, %v47_v55  ;;  %v1990_v52 = vld [vmem:[%s6592_s0 + $0xf4] sm:$0xff] }
  0x33   :  { %4648 = vmatmul.mubr.bf16.gmra.mrb[8].mxu0 %v1600_v1  ;;  %4443 = vmatprep.mubr.bf16.mxu1 %v61_v2  ;;  %v50_v1 = vld [vmem:[%s6592_s0 + $0xf8] sm:$0xff]  ;;  %v5229_v2 = vld [vmem:[%s6593_s1 + $0x1a8] sm:$0xff]  }
  0x34   :  { %4684 = vmatpush3.bf16.msra.mxu0 %v5212_v58  ;;  %4651 = vmatprep.mubr.bf16.mxu0 %v1601_v3  ;;  %v1975_v58 = vld [vmem:[%s6592_s0 + $0x7c] sm:$0xff]  ;;  %v1976_v3 = vld [vmem:[%s6592_s0 + $0x84] sm:$0xff] }
  0x35   :  { %4685 = vmatprep.subr.bf16.mxu0 %v5214_v4  ;;  %4476 = vmatpush3.bf16.msra.mxu1 %v5218_v0  ;;  %v5633_v63 = vpack.c.bf16 %v1975_v58, %v1974_v57  ;;  %v49_v0 = vld [vmem:[%s6592_s0 + $0xf0] sm:$0xff]  ;;  %v5775_v57 = vpack.c.bf16 %v1991_v53, %v1990_v52  ;;  %v5232_v58 = vld [vmem:[%s6593_s1 + $0x98] sm:$0xff]  }
  0x36   :  { %4477 = vmatprep.subr.bf16.mxu1 %v5220_v6  ;;  %v70_v10 = vpack.c.bf16 %v50_v1, %v49_v0  ;;  %v1993_v0 = vld [vmem:[%s6592_s0 + $0x10c] sm:$0xff]  ;;  %v362_v1 = vld [vmem:[%s6592_s0 + $0x61] sm:$0xff] }
  0x38   :  { %4686 = vmatpush3.bf16.msra.mxu0 %v5214_v4  ;;  %v1977_v4 = vld [vmem:[%s6592_s0 + $0x8c] sm:$0xff] }
  0x39   :  { %4687 = vmatprep.subr.bf16.mxu0 %v5215_v12  ;;  %4478 = vmatpush3.bf16.msra.mxu1 %v5220_v6  ;;  %v52_v6 = vld [vmem:[%s6592_s0 + $0x108] sm:$0xff]  ;;  %v5667_v11 = vpack.c.bf16 %v1977_v4, %v1976_v3  ;;  %v1994_v3 = vld [vmem:[%s6592_s0 + $0x114] sm:$0xff]  ;;  %v1995_v4 = vld [vmem:[%s6592_s0 + $0x11c] sm:$0xff] }
  0x3a   :  { %4444 = vmatmul.mubr.bf16.gmra.mrb[12].mxu1 %v62_v15  ;;  %4479 = vmatprep.subr.bf16.mxu1 %v5222_v16  ;;  %v5233_v15 = vld [vmem:[%s6593_s1 + $0x1b8] sm:$0xff]  }
  0x3b   :  { %4652 = vmatmul.mubr.bf16.gmra.mrb[12].mxu0 %v1602_v17  ;;  %4447 = vmatprep.mubr.bf16.mxu1 %v63_v18  ;;  %v1980_v17 = vld [vmem:[%s6592_s0 + $0xa4] sm:$0xff]  ;;  %v1981_v18 = vld [vmem:[%s6592_s0 + $0xac] sm:$0xff] }
  0x3c   :  { %4688 = vmatpush3.bf16.msra.mxu0 %v5215_v12  ;;  %4691 = vmatprep.mubr.bf16.mxu0 %v1998_v19  ;;  %v71_v12 = vpack.c.bf16 %v52_v6, %v51_v5  ;;  %v350_v19 = vld [vmem:[%s6592_s0 + $0x1] sm:$0xff]  ;;  %v5705_v25 = vpack.c.bf16 %v1981_v18, %v1980_v17  ;;  %v367_v18 = vld [vmem:[%s6592_s0 + $0x89] sm:$0xff] }
  0x3d   :  { %4689 = vmatprep.subr.bf16.mxu0 %v5217_v20  ;;  %4480 = vmatpush3.bf16.msra.mxu1 %v5222_v16  ;;  %v54_v16 = vld [vmem:[%s6592_s0 + $0x118] sm:$0xff]  ;;  %v5234_v5 = vld [vmem:[%s6593_s1 + $0xa0] sm:$0xff]  }
  0x3e   :  { %4481 = vmatprep.subr.bf16.mxu1 %v5224_v23  ;;  %v72_v24 = vpack.c.bf16 %v54_v16, %v53_v14  ;;  %v365_v14 = vld [vmem:[%s6592_s0 + $0x79] sm:$0xff]  ;;  %v1997_v16 = vld [vmem:[%s6592_s0 + $0x12c] sm:$0xff]  ;;  %v366_v17 = vld [vmem:[%s6592_s0 + $0x81] sm:$0xff] }
  0x3f   :  { %v394_v22 = vpack.c.bf16 %v367_v18, %v366_v17 }
  0x40   :  { %4690 = vmatpush3.bf16.msra.mxu0 %v5217_v20  ;;  %v351_v20 = vld [vmem:[%s6592_s0 + $0x9] sm:$0xff] }
  0x41   :  { %4727 = vmatprep.subr.bf16.mxu0 %v5219_v30  ;;  %4482 = vmatpush3.bf16.msra.mxu1 %v5224_v23  ;;  %v5703_v23 = vld [vmem:[%s6593_s1 + $0x1c0] sm:$0xff]   ;;  %v386_v26 = vpack.c.bf16 %v351_v20, %v350_v19  ;;  %v5238_v19 = vld [vmem:[%s6593_s1 + $0xb0] sm:$0xff]  }
  0x42   :  { %4448 = vmatmul.mubr.bf16.gmra.mrb[16].mxu1 %v64_v31  ;;  %4519 = vmatprep.subr.bf16.mxu1 %v5556_v32  ;;  %v1985_v31 = vld [vmem:[%s6592_s0 + $0xcc] sm:$0xff] }
  0x43   :  { %4692 = vmatmul.mubr.bf16.vlgmr.msra.gmra.mrb[0].mxu0 %v5558_v33  ;;  %4451 = vmatprep.mubr.bf16.mxu1 %v65_v34  ;;  %v354_v34 = vld [vmem:[%s6592_s0 + $0x21] sm:$0xff] }
  0x44   :  { %4695 = vmatprep.mubr.bf16.mxu0 %v5560_v35  ;;  %4728 = vmatpush3.bf16.msra.mxu0 %v5219_v30  ;;  %v1984_v30 = vld [vmem:[%s6592_s0 + $0xc4] sm:$0xff]  ;;  %v388_v41 = vpack.c.bf16 %v355_v36, %v354_v34 }
  0x45   :  { %4729 = vmatprep.subr.bf16.mxu0 %v5221_v37  ;;  %v5736_v40 = vpack.c.bf16 %v1985_v31, %v1984_v30  ;;  %v371_v30 = vld [vmem:[%s6592_s0 + $0xa9] sm:$0xff]  ;;  %v5861_v31 = vld [vmem:[%s6593_s1 + $0xc0] sm:$0xff]  }
  0x46   :  { %v396_v36 = vpack.c.bf16 %v371_v30, %v370_v29 }
  0x48   :  { %4730 = vmatpush3.bf16.msra.mxu0 %v5221_v37  ;;  %v1986_v37 = vld [vmem:[%s6592_s0 + $0xd4] sm:$0xff] }
  0x49   :  { %4731 = vmatprep.subr.bf16.mxu0 %v5223_v45  ;;  %v5738_v42 = vpack.c.bf16 %v1987_v38, %v1986_v37 }
  0x4a   :  { %4452 = vmatmul.mubr.bf16.gmra.mrb[20].mxu1 %v66_v46  ;;  %v1988_v46 = vld [vmem:[%s6592_s0 + $0xe4] sm:$0xff] }
  0x4b   :  { %4696 = vmatmul.mubr.bf16.gmra.mrb[4].mxu0 %v5595_v47  ;;  %4455 = vmatprep.mubr.bf16.mxu1 %v67_v48  ;;  %v1989_v48 = vld [vmem:[%s6592_s0 + $0xec] sm:$0xff] }
  0x4c   :  { %4699 = vmatprep.mubr.bf16.mxu0 %v5597_v49  ;;  %4732 = vmatpush3.bf16.msra.mxu0 %v5223_v45  ;;  %v357_v45 = vld [vmem:[%s6592_s0 + $0x39] sm:$0xff]  ;;  %v5773_v55 = vpack.c.bf16 %v1989_v48, %v1988_v46 }
  0x4d   :  { %4733 = vmatprep.subr.bf16.mxu0 %v5225_v50  ;;  %v389_v54 = vpack.c.bf16 %v357_v45, %v356_v44 }
  0x50   :  { %4734 = vmatpush3.bf16.msra.mxu0 %v5225_v50  ;;  %v358_v50 = vld [vmem:[%s6592_s0 + $0x41] sm:$0xff] }
  0x51   :  { %4735 = vmatprep.subr.bf16.mxu0 %v5227_v59 }
  0x52   :  { %4456 = vmatmul.mubr.bf16.gmra.mrb[24].mxu1 %v68_v60  ;;  %v361_v60 = vld [vmem:[%s6592_s0 + $0x59] sm:$0xff] }
  0x53   :  { %4700 = vmatmul.mubr.bf16.gmra.mrb[8].mxu0 %v5631_v61  ;;  %4459 = vmatprep.mubr.bf16.mxu1 %v69_v62  ;;  %v1992_v62 = vld [vmem:[%s6592_s0 + $0x104] sm:$0xff] }
  0x54   :  { %4703 = vmatprep.mubr.bf16.mxu0 %v5633_v63  ;;  %4736 = vmatpush3.bf16.msra.mxu0 %v5227_v59  ;;  %v360_v59 = vld [vmem:[%s6592_s0 + $0x51] sm:$0xff]  ;;  %v5809_v7 = vpack.c.bf16 %v1993_v0, %v1992_v62 }
  0x55   :  { %4737 = vmatprep.subr.bf16.mxu0 %v5229_v2  ;;  %v391_v6 = vpack.c.bf16 %v361_v60, %v360_v59 }
  0x58   :  { %4738 = vmatpush3.bf16.msra.mxu0 %v5229_v2  ;;  %v363_v2 = vld [vmem:[%s6592_s0 + $0x69] sm:$0xff] }
  0x59   :  { %4739 = vmatprep.subr.bf16.mxu0 %v5231_v9  ;;  %v392_v8 = vpack.c.bf16 %v363_v2, %v362_v1 }
  0x5a   :  { %4460 = vmatmul.mubr.bf16.gmra.mrb[28].mxu1 %v70_v10  ;;  %v5236_v10 = vld [vmem:[%s6593_s1 + $0xa8] sm:$0xff]  }
  0x5b   :  { %4704 = vmatmul.mubr.bf16.gmra.mrb[12].mxu0 %v5667_v11  ;;  %4463 = vmatprep.mubr.bf16.mxu1 %v71_v12  ;;  %v364_v12 = vld [vmem:[%s6592_s0 + $0x71] sm:$0xff] }
  0x5c   :  { %4707 = vmatprep.mubr.bf16.mxu0 %v5669_v13  ;;  %4740 = vmatpush3.bf16.msra.mxu0 %v5231_v9  ;;  %v5811_v9 = vpack.c.bf16 %v1995_v4, %v1994_v3  ;;  %v393_v20 = vpack.c.bf16 %v365_v14, %v364_v12 }
  0x5d   :  { %4741 = vmatprep.subr.bf16.mxu0 %v5233_v15 }
  0x60   :  { %4742 = vmatpush3.bf16.msra.mxu0 %v5233_v15  ;;  %v1996_v15 = vld [vmem:[%s6592_s0 + $0x124] sm:$0xff] }
  0x61   :  { %4779 = vmatprep.subr.bf16.mxu0 %v5703_v23  ;;  %v5839_v21 = vpack.c.bf16 %v1997_v16, %v1996_v15 }
  0x62   :  { %4464 = vmatmul.mubr.bf16.gmra.mrb[32].mxu1 %v72_v24  ;;  %v5240_v24 = vld [vmem:[%s6593_s1 + $0xb8] sm:$0xff]  }
  0x63   :  { %4708 = vmatmul.mubr.bf16.gmra.mrb[16].mxu0 %v5705_v25  ;;  %4483 = vmatprep.mubr.bf16.mxu1 %v386_v26  ;;  %v368_v26 = vld [vmem:[%s6592_s0 + $0x91] sm:$0xff] }
  0x64   :  { %4711 = vmatprep.mubr.bf16.mxu0 %v5707_v27  ;;  %v395_v34 = vpack.c.bf16 %v369_v28, %v368_v26 }
  0x6a   :  { %4484 = vmatmul.mubr.bf16.vlgmr.msra.gmra.mrb[0].mxu1 %v387_v39 }
  0x6b   :  { %4712 = vmatmul.mubr.bf16.gmra.mrb[20].mxu0 %v5736_v40  ;;  %4520 = vmatpush3.bf16.msra.mxu1 %v5556_v32  ;;  %v359_v32 = vld [vmem:[%s6592_s0 + $0x49] sm:$0xff] }
  0x6c   :  { %4487 = vmatprep.mubr.bf16.mxu1 %v388_v41  ;;  %4715 = vmatprep.mubr.bf16.mxu0 %v5738_v42  ;;  %v390_v56 = vpack.c.bf16 %v359_v32, %v358_v50 }
  0x6d   :  { %4521 = vmatprep.subr.bf16.mxu1 %v5228_v43 }
  0x6f   :  { %4522 = vmatpush3.bf16.msra.mxu1 %v5228_v43 }
  0x70   :  { %4523 = vmatprep.subr.bf16.mxu1 %v5230_v51 }
  0x72   :  { %4488 = vmatmul.mubr.bf16.gmra.mrb[4].mxu1 %v389_v54 }
  0x73   :  { %4716 = vmatmul.mubr.bf16.gmra.mrb[24].mxu0 %v5773_v55  ;;  %4491 = vmatprep.mubr.bf16.mxu1 %v390_v56 }
  0x74   :  { %4719 = vmatprep.mubr.bf16.mxu0 %v5775_v57  ;;  %4524 = vmatpush3.bf16.msra.mxu1 %v5230_v51 }
  0x75   :  { %4525 = vmatprep.subr.bf16.mxu1 %v5232_v58 }
  0x78   :  { %4526 = vmatpush3.bf16.msra.mxu1 %v5232_v58 }
  0x79   :  { %4527 = vmatprep.subr.bf16.mxu1 %v5234_v5 }
  0x7a   :  { %4492 = vmatmul.mubr.bf16.gmra.mrb[8].mxu1 %v391_v6 }
  0x7b   :  { %4720 = vmatmul.mubr.bf16.gmra.mrb[28].mxu0 %v5809_v7  ;;  %4495 = vmatprep.mubr.bf16.mxu1 %v392_v8 }
  0x7c   :  { %4723 = vmatprep.mubr.bf16.mxu0 %v5811_v9  ;;  %4528 = vmatpush3.bf16.msra.mxu1 %v5234_v5 }
  0x7d   :  { %4529 = vmatprep.subr.bf16.mxu1 %v5236_v10 }
  0x80   :  { %4530 = vmatpush3.bf16.msra.mxu1 %v5236_v10 }
  0x81   :  { %4531 = vmatprep.subr.bf16.mxu1 %v5238_v19 }
  0x82   :  { %4496 = vmatmul.mubr.bf16.gmra.mrb[12].mxu1 %v393_v20 }
  0x83   :  { %4724 = vmatmul.mubr.bf16.gmra.mrb[32].mxu0 %v5839_v21  ;;  %4499 = vmatprep.mubr.bf16.mxu1 %v394_v22 }
  0x84   :  { %4743 = vmatprep.mubr.bf16.mxu0 %v5558_v33  ;;  %4532 = vmatpush3.bf16.msra.mxu1 %v5238_v19 }
  0x85   :  { %4533 = vmatprep.subr.bf16.mxu1 %v5240_v24 }
  0x86   :  { %9 = vsyncpa [#allocation4], 0  ;;  %v5237_v37 = vld [vmem:[%s6593_s1 + $0x1c8] sm:$0xff]   ;;  %v372_v33 = vld [vmem:[%s6592_s0 + $0xb1] sm:$0xff] }
  0x87   :  { %v373_v38 = vld [vmem:[%s6592_s0 + $0xb9] sm:$0xff]  ;;  %v374_v39 = vld [vmem:[%s6592_s0 + $0xc1] sm:$0xff]  ;;  %v5239_v41 = vld [vmem:[%s6593_s1 + $0x1d0] sm:$0xff]  }
  0x88   :  { %4534 = vmatpush3.bf16.msra.mxu1 %v5240_v24  ;;  %v397_v43 = vpack.c.bf16 %v373_v38, %v372_v33  ;;  %v377_v45 = vld [vmem:[%s6592_s0 + $0xd9] sm:$0xff]  ;;  %v378_v46 = vld [vmem:[%s6592_s0 + $0xe1] sm:$0xff]  ;;  %v379_v48 = vld [vmem:[%s6592_s0 + $0xe9] sm:$0xff] }
  0x89   :  { %4571 = vmatprep.subr.bf16.mxu1 %v5861_v31  ;;  %v400_v32 = vpack.c.bf16 %v379_v48, %v378_v46  ;;  %v380_v51 = vld [vmem:[%s6592_s0 + $0xf1] sm:$0xff]  ;;  %v381_v52 = vld [vmem:[%s6592_s0 + $0xf9] sm:$0xff]  ;;  %v382_v53 = vld [vmem:[%s6592_s0 + $0x101] sm:$0xff] }
  0x8a   :  { %4500 = vmatmul.mubr.bf16.gmra.mrb[16].mxu1 %v395_v34  ;;  %v383_v54 = vld [vmem:[%s6592_s0 + $0x109] sm:$0xff]  ;;  %v401_v56 = vpack.c.bf16 %v381_v52, %v380_v51  ;;  %v384_v59 = vld [vmem:[%s6592_s0 + $0x111] sm:$0xff]  ;;  %v385_v60 = vld [vmem:[%s6592_s0 + $0x119] sm:$0xff] }
  0x8b   :  { %4744 = vmatmul.mubr.bf16.vlgmr.msra.gmra.mrb[0].mxu0 %v5560_v35  ;;  %4503 = vmatprep.mubr.bf16.mxu1 %v396_v36  ;;  %v375_v35 = vld [vmem:[%s6592_s0 + $0xc9] sm:$0xff]  ;;  %v402_v58 = vpack.c.bf16 %v383_v54, %v382_v53  ;;  %v403_v1 = vpack.c.bf16 %v385_v60, %v384_v59  ;;  %v756_v3 = vld [vmem:[%s6592_s0 + $0x1a] sm:$0xff]  ;;  %v763_v17 = vld [vmem:[%s6592_s0 + $0x52] sm:$0xff] }
  0x8c   :  { %4747 = vmatprep.mubr.bf16.mxu0 %v5595_v47  ;;  %4780 = vmatpush3.bf16.msra.mxu0 %v5703_v23  ;;  %v398_v44 = vpack.c.bf16 %v375_v35, %v374_v39  ;;  %v5241_v47 = vld [vmem:[%s6593_s1 + $0x1d8] sm:$0xff]   ;;  %v753_v62 = vld [vmem:[%s6592_s0 + $0x2] sm:$0xff]  ;;  %v754_v0 = vld [vmem:[%s6592_s0 + $0xa] sm:$0xff] }
  0x8d   :  { %4781 = vmatprep.subr.bf16.mxu0 %v5237_v37  ;;  %v376_v23 = vld [vmem:[%s6592_s0 + $0xd1] sm:$0xff]  ;;  %v789_v2 = vpack.c.bf16 %v754_v0, %v753_v62  ;;  %v757_v4 = vld [vmem:[%s6592_s0 + $0x22] sm:$0xff]  ;;  %v760_v10 = vld [vmem:[%s6592_s0 + $0x3a] sm:$0xff] }
  0x8e   :  { %v399_v50 = vpack.c.bf16 %v377_v45, %v376_v23  ;;  %v758_v5 = vld [vmem:[%s6592_s0 + $0x2a] sm:$0xff]  ;;  %v761_v12 = vld [vmem:[%s6592_s0 + $0x42] sm:$0xff]  ;;  %v764_v18 = vld [vmem:[%s6592_s0 + $0x5a] sm:$0xff] }
  0x8f   :  { %v5964_v6 = vpack.c.bf16 %v758_v5, %v757_v4  ;;  %v5244_v8 = vld [vmem:[%s6593_s1 + $0xc8] sm:$0xff]   ;;  %v5246_v14 = vld [vmem:[%s6593_s1 + $0xd0] sm:$0xff]   ;;  %v5250_v20 = vld [vmem:[%s6593_s1 + $0xe0] sm:$0xff]   ;;  %v6015_v22 = vpack.c.bf16 %v764_v18, %v763_v17 }
  0x90   :  { %4782 = vmatpush3.bf16.msra.mxu0 %v5237_v37  ;;  %v765_v19 = vld [vmem:[%s6592_s0 + $0x62] sm:$0xff]  ;;  %v767_v26 = vld [vmem:[%s6592_s0 + $0x72] sm:$0xff]  ;;  %v768_v28 = vld [vmem:[%s6592_s0 + $0x7a] sm:$0xff] }
  0x91   :  { %4783 = vmatprep.subr.bf16.mxu0 %v5239_v41  ;;  %v2399_v29 = vld [vmem:[%s6592_s0 + $0x134] sm:$0xff]  ;;  %v769_v30 = vld [vmem:[%s6592_s0 + $0x82] sm:$0xff]  ;;  %v6053_v37 = vpack.c.bf16 %v768_v28, %v767_v26  ;;  %v774_v45 = vld [vmem:[%s6592_s0 + $0xaa] sm:$0xff] }
  0x92   :  { %4504 = vmatmul.mubr.bf16.gmra.mrb[20].mxu1 %v397_v43  ;;  %v2768_v34 = vld [vmem:[%s6592_s0 + $0x25] sm:$0xff]  ;;  %v5254_v36 = vld [vmem:[%s6593_s1 + $0xf0] sm:$0xff]   ;;  %v5256_v35 = vld [vmem:[%s6593_s1 + $0xf8] sm:$0xff]  }
  0x93   :  { %4748 = vmatmul.mubr.bf16.gmra.mrb[4].mxu0 %v5597_v49  ;;  %4507 = vmatprep.mubr.bf16.mxu1 %v398_v44  ;;  %v5243_v49 = vld [vmem:[%s6593_s1 + $0x1e0] sm:$0xff]   ;;  %v2770_v44 = vld [vmem:[%s6592_s0 + $0x35] sm:$0xff]  ;;  %v2773_v48 = vld [vmem:[%s6592_s0 + $0x4d] sm:$0xff] }
  0x94   :  { %4751 = vmatprep.mubr.bf16.mxu0 %v5631_v61  ;;  %4784 = vmatpush3.bf16.msra.mxu0 %v5239_v41  ;;  %v5245_v61 = vld [vmem:[%s6593_s1 + $0x1e8] sm:$0xff]   ;;  %v771_v41 = vld [vmem:[%s6592_s0 + $0x92] sm:$0xff]  ;;  %v772_v43 = vld [vmem:[%s6592_s0 + $0x9a] sm:$0xff] }
  0x95   :  { %4785 = vmatprep.subr.bf16.mxu0 %v5241_v47  ;;  %v773_v23 = vld [vmem:[%s6592_s0 + $0xa2] sm:$0xff]  ;;  %v775_v53 = vld [vmem:[%s6592_s0 + $0xb2] sm:$0xff]  ;;  %v776_v54 = vld [vmem:[%s6592_s0 + $0xba] sm:$0xff] }
  0x96   :  { %v2772_v46 = vld [vmem:[%s6592_s0 + $0x45] sm:$0xff]  ;;  %v2777_v60 = vld [vmem:[%s6592_s0 + $0x6d] sm:$0xff]  ;;  %v6129_v0 = vpack.c.bf16 %v776_v54, %v775_v53  ;;  %v780_v4 = vld [vmem:[%s6592_s0 + $0xda] sm:$0xff] }
  0x97   :  { %v5253_v51 = vld [vmem:[%s6593_s1 + $0x208] sm:$0xff]   ;;  %v6096_v52 = vld [vmem:[%s6593_s1 + $0x100] sm:$0xff]   ;;  %v5255_v62 = vld [vmem:[%s6593_s1 + $0x210] sm:$0xff]  }
  0x98   :  { %4786 = vmatpush3.bf16.msra.mxu0 %v5241_v47  ;;  %v2771_v47 = vld [vmem:[%s6592_s0 + $0x3d] sm:$0xff]  ;;  %v2776_v59 = vld [vmem:[%s6592_s0 + $0x65] sm:$0xff]  ;;  %v2778_v5 = vld [vmem:[%s6592_s0 + $0x75] sm:$0xff] }
  0x99   :  { %4787 = vmatprep.subr.bf16.mxu0 %v5243_v49  ;;  %v2782_v26 = vld [vmem:[%s6592_s0 + $0x95] sm:$0xff]  ;;  %v2783_v28 = vld [vmem:[%s6592_s0 + $0x9d] sm:$0xff]  ;;  %v2792_v53 = vld [vmem:[%s6592_s0 + $0xe5] sm:$0xff] }
  0x9a   :  { %4508 = vmatmul.mubr.bf16.gmra.mrb[24].mxu1 %v399_v50  ;;  %v2805_v50 = vpack.c.bf16 %v2771_v47, %v2770_v44  ;;  %v2786_v44 = vld [vmem:[%s6592_s0 + $0xb5] sm:$0xff]  ;;  %v2787_v47 = vld [vmem:[%s6592_s0 + $0xbd] sm:$0xff]  ;;  %v2793_v54 = vld [vmem:[%s6592_s0 + $0xed] sm:$0xff] }
  0x9b   :  { %4752 = vmatmul.mubr.bf16.gmra.mrb[8].mxu0 %v5633_v63  ;;  %4511 = vmatprep.mubr.bf16.mxu1 %v400_v32  ;;  %v5247_v63 = vld [vmem:[%s6593_s1 + $0x1f0] sm:$0xff]   ;;  %v6088_v32 = vpack.c.bf16 %v774_v45, %v773_v23  ;;  %v2788_v23 = vld [vmem:[%s6592_s0 + $0xc5] sm:$0xff] }
  0x9c   :  { %4755 = vmatprep.mubr.bf16.mxu0 %v5667_v11  ;;  %4788 = vmatpush3.bf16.msra.mxu0 %v5243_v49  ;;  %v5249_v11 = vld [vmem:[%s6593_s1 + $0x1f8] sm:$0xff]   ;;  %v6086_v49 = vpack.c.bf16 %v772_v43, %v771_v41  ;;  %v2789_v45 = vld [vmem:[%s6592_s0 + $0xcd] sm:$0xff] }
  0x9d   :  { %4789 = vmatprep.subr.bf16.mxu0 %v5245_v61  ;;  %v787_v41 = vld [vmem:[%s6592_s0 + $0x112] sm:$0xff]  ;;  %v788_v43 = vld [vmem:[%s6592_s0 + $0x11a] sm:$0xff] }
  0xa0   :  { %4790 = vmatpush3.bf16.msra.mxu0 %v5245_v61  ;;  %v2806_v61 = vpack.c.bf16 %v2773_v48, %v2772_v46  ;;  %v6228_v46 = vpack.c.bf16 %v788_v43, %v787_v41  ;;  %v2813_v48 = vpack.c.bf16 %v2787_v47, %v2786_v44  ;;  %v1191_v44 = vld [vmem:[%s6592_s0 + $0x12a] sm:$0xff]  ;;  %v3189_v47 = vld [vmem:[%s6592_s0 + $0xb6] sm:$0xff] }
  0xa1   :  { %4791 = vmatprep.subr.bf16.mxu0 %v5247_v63 }
  0xa2   :  { %4512 = vmatmul.mubr.bf16.gmra.mrb[28].mxu1 %v401_v56  ;;  %v2775_v56 = vld [vmem:[%s6592_s0 + $0x5d] sm:$0xff] }
  0xa3   :  { %4756 = vmatmul.mubr.bf16.gmra.mrb[12].mxu0 %v5669_v13  ;;  %4515 = vmatprep.mubr.bf16.mxu1 %v402_v58  ;;  %v5945_v13 = vld [vmem:[%s6593_s1 + $0x200] sm:$0xff]  }
  0xa4   :  { %4759 = vmatprep.mubr.bf16.mxu0 %v5705_v25  ;;  %4792 = vmatpush3.bf16.msra.mxu0 %v5247_v63  ;;  %v755_v25 = vld [vmem:[%s6592_s0 + $0x12] sm:$0xff]  ;;  %v777_v58 = vld [vmem:[%s6592_s0 + $0xc2] sm:$0xff] }
  0xa5   :  { %4793 = vmatprep.subr.bf16.mxu0 %v5249_v11  ;;  %v2774_v63 = vld [vmem:[%s6592_s0 + $0x55] sm:$0xff] }
  0xa8   :  { %4794 = vmatpush3.bf16.msra.mxu0 %v5249_v11  ;;  %v778_v11 = vld [vmem:[%s6592_s0 + $0xca] sm:$0xff] }
  0xa9   :  { %4831 = vmatprep.subr.bf16.mxu0 %v5945_v13 }
  0xaa   :  { %4516 = vmatmul.mubr.bf16.gmra.mrb[32].mxu1 %v403_v1  ;;  %v6131_v1 = vpack.c.bf16 %v778_v11, %v777_v58  ;;  %v2795_v58 = vld [vmem:[%s6592_s0 + $0xfd] sm:$0xff]  ;;  %v5263_v11 = vld [vmem:[%s6593_s1 + $0x108] sm:$0xff]  }
  0xab   :  { %4760 = vmatmul.mubr.bf16.gmra.mrb[16].mxu0 %v5707_v27  ;;  %4535 = vmatprep.mubr.bf16.mxu1 %v789_v2  ;;  %v5962_v27 = vpack.c.bf16 %v756_v3, %v755_v25  ;;  %v2808_v2 = vpack.c.bf16 %v2777_v60, %v2776_v59  ;;  %v5257_v25 = vld [vmem:[%s6593_s1 + $0x218] sm:$0xff]   ;;  %v5264_v60 = vld [vmem:[%s6593_s1 + $0x110] sm:$0xff]  }
  0xac   :  { %4763 = vmatprep.mubr.bf16.mxu0 %v5736_v40  ;;  %v759_v40 = vld [vmem:[%s6592_s0 + $0x32] sm:$0xff] }
  0xad   :  { %v5989_v15 = vpack.c.bf16 %v760_v10, %v759_v40  ;;  %v779_v3 = vld [vmem:[%s6592_s0 + $0xd2] sm:$0xff]  ;;  %v781_v40 = vld [vmem:[%s6592_s0 + $0xe2] sm:$0xff]  ;;  %v782_v10 = vld [vmem:[%s6592_s0 + $0xea] sm:$0xff] }
  0xae   :  { %v6167_v18 = vpack.c.bf16 %v782_v10, %v781_v40  ;;  %v3171_v40 = vld [vmem:[%s6592_s0 + $0x26] sm:$0xff] }
  0xb2   :  { %4536 = vmatmul.mubr.bf16.vlgmr.msra.gmra.mrb[0].mxu1 %v5962_v27 }
  0xb3   :  { %4764 = vmatmul.mubr.bf16.gmra.mrb[20].mxu0 %v5738_v42  ;;  %4572 = vmatpush3.bf16.msra.mxu1 %v5861_v31  ;;  %v762_v42 = vld [vmem:[%s6592_s0 + $0x4a] sm:$0xff] }
  0xb4   :  { %4539 = vmatprep.mubr.bf16.mxu1 %v5964_v6  ;;  %4767 = vmatprep.mubr.bf16.mxu0 %v5773_v55  ;;  %v5991_v16 = vpack.c.bf16 %v762_v42, %v761_v12  ;;  %v5248_v55 = vld [vmem:[%s6593_s1 + $0xd8] sm:$0xff]   ;;  %v770_v31 = vld [vmem:[%s6592_s0 + $0x8a] sm:$0xff] }
  0xb5   :  { %4573 = vmatprep.subr.bf16.mxu1 %v5244_v8  ;;  %v6055_v38 = vpack.c.bf16 %v770_v31, %v769_v30  ;;  %v2780_v12 = vld [vmem:[%s6592_s0 + $0x85] sm:$0xff]  ;;  %v2781_v42 = vld [vmem:[%s6592_s0 + $0x8d] sm:$0xff] }
  0xb6   :  { %v2784_v30 = vld [vmem:[%s6592_s0 + $0xa5] sm:$0xff]  ;;  %v2785_v31 = vld [vmem:[%s6592_s0 + $0xad] sm:$0xff] }
  0xb7   :  { %4574 = vmatpush3.bf16.msra.mxu1 %v5244_v8  ;;  %v2779_v8 = vld [vmem:[%s6592_s0 + $0x7d] sm:$0xff] }
  0xb8   :  { %4575 = vmatprep.subr.bf16.mxu1 %v5246_v14  ;;  %v2809_v17 = vpack.c.bf16 %v2779_v8, %v2778_v5  ;;  %v2802_v5 = vld [vmem:[%s6592_s0 + $0x135] sm:$0xff]  ;;  %v2803_v8 = vld [vmem:[%s6592_s0 + $0x13d] sm:$0xff] }
  0xb9   :  { %v2821_v10 = vpack.c.bf16 %v2803_v8, %v2802_v5  ;;  %v3200_v5 = vld [vmem:[%s6592_s0 + $0x10e] sm:$0xff] }
  0xba   :  { %4540 = vmatmul.mubr.bf16.gmra.mrb[4].mxu1 %v5989_v15 }
  0xbb   :  { %4768 = vmatmul.mubr.bf16.gmra.mrb[24].mxu0 %v5775_v57  ;;  %4543 = vmatprep.mubr.bf16.mxu1 %v5991_v16  ;;  %v766_v57 = vld [vmem:[%s6592_s0 + $0x6a] sm:$0xff] }
  0xbc   :  { %4771 = vmatprep.mubr.bf16.mxu0 %v5809_v7  ;;  %4576 = vmatpush3.bf16.msra.mxu1 %v5246_v14  ;;  %v6017_v24 = vpack.c.bf16 %v766_v57, %v765_v19  ;;  %v5252_v7 = vld [vmem:[%s6593_s1 + $0xe8] sm:$0xff]   ;;  %v5258_v14 = vld [vmem:[%s6593_s1 + $0x220] sm:$0xff]   ;;  %v2810_v19 = vpack.c.bf16 %v2781_v42, %v2780_v12  ;;  %v5268_v42 = vld [vmem:[%s6593_s1 + $0x130] sm:$0xff]  }
  0xbd   :  { %4577 = vmatprep.subr.bf16.mxu1 %v5248_v55  ;;  %v5259_v57 = vld [vmem:[%s6593_s1 + $0x228] sm:$0xff]  }
  0xc0   :  { %4578 = vmatpush3.bf16.msra.mxu1 %v5248_v55  ;;  %v6165_v55 = vpack.c.bf16 %v780_v4, %v779_v3  ;;  %v5266_v4 = vld [vmem:[%s6593_s1 + $0x120] sm:$0xff]  }
  0xc1   :  { %4579 = vmatprep.subr.bf16.mxu1 %v5250_v20 }
  0xc2   :  { %4544 = vmatmul.mubr.bf16.gmra.mrb[8].mxu1 %v6015_v22 }
  0xc3   :  { %4772 = vmatmul.mubr.bf16.gmra.mrb[28].mxu0 %v5811_v9  ;;  %4547 = vmatprep.mubr.bf16.mxu1 %v6017_v24  ;;  %v2400_v9 = vld [vmem:[%s6592_s0 + $0x13c] sm:$0xff] }
  0xc4   :  { %4775 = vmatprep.mubr.bf16.mxu0 %v5839_v21  ;;  %4580 = vmatpush3.bf16.msra.mxu1 %v5250_v20  ;;  %v2769_v21 = vld [vmem:[%s6592_s0 + $0x2d] sm:$0xff]  ;;  %v2418_v33 = vpack.c.bf16 %v2400_v9, %v2399_v29  ;;  %v785_v29 = vld [vmem:[%s6592_s0 + $0x102] sm:$0xff] }
  0xc5   :  { %4581 = vmatprep.subr.bf16.mxu1 %v5252_v7  ;;  %v2804_v39 = vpack.c.bf16 %v2769_v21, %v2768_v34  ;;  %v783_v20 = vld [vmem:[%s6592_s0 + $0xf2] sm:$0xff]  ;;  %v786_v9 = vld [vmem:[%s6592_s0 + $0x10a] sm:$0xff] }
  0xc6   :  { %v5260_v34 = vld [vmem:[%s6593_s1 + $0x230] sm:$0xff]  }
  0xc8   :  { %4582 = vmatpush3.bf16.msra.mxu1 %v5252_v7  ;;  %v784_v7 = vld [vmem:[%s6592_s0 + $0xfa] sm:$0xff] }
  0xc9   :  { %4583 = vmatprep.subr.bf16.mxu1 %v5254_v36  ;;  %v6201_v21 = vpack.c.bf16 %v784_v7, %v783_v20  ;;  %v3177_v7 = vld [vmem:[%s6592_s0 + $0x56] sm:$0xff] }
  0xca   :  { %4548 = vmatmul.mubr.bf16.gmra.mrb[12].mxu1 %v6053_v37 }
  0xcb   :  { %4776 = vmatmul.mubr.bf16.gmra.mrb[32].mxu0 %v2418_v33  ;;  %4551 = vmatprep.mubr.bf16.mxu1 %v6055_v38  ;;  %v6203_v33 = vpack.c.bf16 %v786_v9, %v785_v29 }
  0xcc   :  { %4795 = vmatprep.mubr.bf16.mxu0 %v2804_v39  ;;  %4584 = vmatpush3.bf16.msra.mxu1 %v5254_v36  ;;  %v2811_v36 = vpack.c.bf16 %v2783_v28, %v2782_v26  ;;  %v2812_v39 = vpack.c.bf16 %v2785_v31, %v2784_v30  ;;  %v3178_v26 = vld [vmem:[%s6592_s0 + $0x5e] sm:$0xff]  ;;  %v3179_v28 = vld [vmem:[%s6592_s0 + $0x66] sm:$0xff] }
  0xcd   :  { %4585 = vmatprep.subr.bf16.mxu1 %v5256_v35  ;;  %v3210_v29 = vpack.c.bf16 %v3178_v26, %v3177_v7  ;;  %v3182_v30 = vld [vmem:[%s6592_s0 + $0x7e] sm:$0xff]  ;;  %v3183_v31 = vld [vmem:[%s6592_s0 + $0x86] sm:$0xff] }
  0xd0   :  { %4586 = vmatpush3.bf16.msra.mxu1 %v5256_v35  ;;  %v5261_v35 = vld [vmem:[%s6593_s1 + $0x238] sm:$0xff]  }
  0xd1   :  { %4883 = vmatprep.subr.bf16.mxu1 %v6096_v52 }
  0xd2   :  { %4552 = vmatmul.mubr.bf16.gmra.mrb[16].mxu1 %v6086_v49 }
  0xd3   :  { %4796 = vmatmul.mubr.bf16.vlgmr.msra.gmra.mrb[0].mxu0 %v2805_v50  ;;  %4555 = vmatprep.mubr.bf16.mxu1 %v6088_v32  ;;  %v2814_v50 = vpack.c.bf16 %v2789_v45, %v2788_v23  ;;  %v1575_v23 = vld [vmem:[%s6592_s0 + $0x93] sm:$0xff]  ;;  %v1576_v45 = vld [vmem:[%s6592_s0 + $0x9b] sm:$0xff] }
  0xd4   :  { %4799 = vmatprep.mubr.bf16.mxu0 %v2806_v61  ;;  %4832 = vmatpush3.bf16.msra.mxu0 %v5945_v13  ;;  %v2807_v13 = vpack.c.bf16 %v2775_v56, %v2774_v63  ;;  %v2790_v61 = vld [vmem:[%s6592_s0 + $0xd5] sm:$0xff]  ;;  %v2816_v56 = vpack.c.bf16 %v2793_v54, %v2792_v53  ;;  %v1577_v54 = vld [vmem:[%s6592_s0 + $0xa3] sm:$0xff] }
  0xd5   :  { %4833 = vmatprep.subr.bf16.mxu0 %v5253_v51 }
  0xd8   :  { %4834 = vmatpush3.bf16.msra.mxu0 %v5253_v51  ;;  %v2791_v51 = vld [vmem:[%s6592_s0 + $0xdd] sm:$0xff] }
  0xd9   :  { %4835 = vmatprep.subr.bf16.mxu0 %v5255_v62  ;;  %v2815_v63 = vpack.c.bf16 %v2791_v51, %v2790_v61  ;;  %v1603_v51 = vpack.c.bf16 %v1576_v45, %v1575_v23 }
  0xda   :  { %4556 = vmatmul.mubr.bf16.gmra.mrb[20].mxu1 %v6129_v0 }
  0xdb   :  { %4800 = vmatmul.mubr.bf16.gmra.mrb[4].mxu0 %v2807_v13  ;;  %4559 = vmatprep.mubr.bf16.mxu1 %v6131_v1  ;;  %v2799_v13 = vld [vmem:[%s6592_s0 + $0x11d] sm:$0xff] }
  0xdc   :  { %4803 = vmatprep.mubr.bf16.mxu0 %v2808_v2  ;;  %4836 = vmatpush3.bf16.msra.mxu0 %v5255_v62  ;;  %v2798_v62 = vld [vmem:[%s6592_s0 + $0x115] sm:$0xff]  ;;  %v2800_v2 = vld [vmem:[%s6592_s0 + $0x125] sm:$0xff] }
  0xdd   :  { %4837 = vmatprep.subr.bf16.mxu0 %v5257_v25 }
  0xe0   :  { %4838 = vmatpush3.bf16.msra.mxu0 %v5257_v25  ;;  %v2819_v25 = vpack.c.bf16 %v2799_v13, %v2798_v62  ;;  %v1581_v13 = vld [vmem:[%s6592_s0 + $0xc3] sm:$0xff] }
  0xe1   :  { %4839 = vmatprep.subr.bf16.mxu0 %v5258_v14 }
  0xe2   :  { %4560 = vmatmul.mubr.bf16.gmra.mrb[24].mxu1 %v6165_v55 }
  0xe3   :  { %4804 = vmatmul.mubr.bf16.gmra.mrb[8].mxu0 %v2809_v17  ;;  %4563 = vmatprep.mubr.bf16.mxu1 %v6167_v18  ;;  %v3174_v17 = vld [vmem:[%s6592_s0 + $0x3e] sm:$0xff] }
  0xe4   :  { %4807 = vmatprep.mubr.bf16.mxu0 %v2810_v19  ;;  %4840 = vmatpush3.bf16.msra.mxu0 %v5258_v14  ;;  %v3173_v14 = vld [vmem:[%s6592_s0 + $0x36] sm:$0xff]  ;;  %v3175_v19 = vld [vmem:[%s6592_s0 + $0x46] sm:$0xff] }
  0xe5   :  { %4841 = vmatprep.subr.bf16.mxu0 %v5259_v57 }
  0xe8   :  { %4842 = vmatpush3.bf16.msra.mxu0 %v5259_v57  ;;  %v3208_v57 = vpack.c.bf16 %v3174_v17, %v3173_v14  ;;  %v3202_v14 = vld [vmem:[%s6592_s0 + $0x11e] sm:$0xff]  ;;  %v1587_v17 = vld [vmem:[%s6592_s0 + $0xf3] sm:$0xff] }
  0xe9   :  { %4843 = vmatprep.subr.bf16.mxu0 %v5260_v34 }
  0xea   :  { %4564 = vmatmul.mubr.bf16.gmra.mrb[28].mxu1 %v6201_v21 }
  0xeb   :  { %4808 = vmatmul.mubr.bf16.gmra.mrb[12].mxu0 %v2811_v36  ;;  %4567 = vmatprep.mubr.bf16.mxu1 %v6203_v33 }
  0xec   :  { %4811 = vmatprep.mubr.bf16.mxu0 %v2812_v39  ;;  %4844 = vmatpush3.bf16.msra.mxu0 %v5260_v34  ;;  %v3186_v39 = vld [vmem:[%s6592_s0 + $0x9e] sm:$0xff] }
  0xed   :  { %4845 = vmatprep.subr.bf16.mxu0 %v5261_v35 }
  0xf0   :  { %4846 = vmatpush3.bf16.msra.mxu0 %v5261_v35  ;;  %v3187_v35 = vld [vmem:[%s6592_s0 + $0xa6] sm:$0xff] }
  0xf2   :  { %4568 = vmatmul.mubr.bf16.gmra.mrb[32].mxu1 %v6228_v46 }
  0xf3   :  { %4812 = vmatmul.mubr.bf16.gmra.mrb[16].mxu0 %v2813_v48  ;;  %4587 = vmatprep.mubr.bf16.mxu1 %v5962_v27  ;;  %v2794_v27 = vld [vmem:[%s6592_s0 + $0xf5] sm:$0xff] }
  0xf4   :  { %4815 = vmatprep.mubr.bf16.mxu0 %v2814_v50  ;;  %v3192_v48 = vld [vmem:[%s6592_s0 + $0xce] sm:$0xff] }
  0xfa   :  { %4588 = vmatmul.mubr.bf16.vlgmr.msra.gmra.mrb[0].mxu1 %v5964_v6  ;;  %v2796_v6 = vld [vmem:[%s6592_s0 + $0x105] sm:$0xff] }
  0xfb   :  { %4816 = vmatmul.mubr.bf16.gmra.mrb[20].mxu0 %v2815_v63  ;;  %4891 = vmatpush3.bf16.msra.mxu1 %v6096_v52  ;;  %v2817_v52 = vpack.c.bf16 %v2795_v58, %v2794_v27  ;;  %v1578_v63 = vld [vmem:[%s6592_s0 + $0xab] sm:$0xff]  ;;  %v3194_v27 = vld [vmem:[%s6592_s0 + $0xde] sm:$0xff]  ;;  %v1579_v58 = vld [vmem:[%s6592_s0 + $0xb3] sm:$0xff] }
  0xfc   :  { %4591 = vmatprep.mubr.bf16.mxu1 %v5989_v15  ;;  %4819 = vmatprep.mubr.bf16.mxu0 %v2816_v56  ;;  %v2797_v15 = vld [vmem:[%s6592_s0 + $0x10d] sm:$0xff]  ;;  %v3193_v56 = vld [vmem:[%s6592_s0 + $0xd6] sm:$0xff] }
  0xfd   :  { %4884 = vmatprep.subr.bf16.mxu1 %v5263_v11  ;;  %v2818_v59 = vpack.c.bf16 %v2797_v15, %v2796_v6  ;;  %v3195_v6 = vld [vmem:[%s6592_s0 + $0xe6] sm:$0xff]  ;;  %v3196_v15 = vld [vmem:[%s6592_s0 + $0xee] sm:$0xff] }
  0xfe   :  { %v3219_v62 = vpack.c.bf16 %v3196_v15, %v3195_v6 }
  0xff   :  { %4892 = vmatpush3.bf16.msra.mxu1 %v5263_v11  ;;  %v1580_v11 = vld [vmem:[%s6592_s0 + $0xbb] sm:$0xff] }
 0x100   :  { %4885 = vmatprep.subr.bf16.mxu1 %v5264_v60 }
 0x102   :  { %4592 = vmatmul.mubr.bf16.gmra.mrb[4].mxu1 %v5991_v16  ;;  %v2801_v16 = vld [vmem:[%s6592_s0 + $0x12d] sm:$0xff] }
 0x103   :  { %4820 = vmatmul.mubr.bf16.gmra.mrb[24].mxu0 %v2817_v52  ;;  %4595 = vmatprep.mubr.bf16.mxu1 %v6015_v22  ;;  %v5265_v22 = vld [vmem:[%s6593_s1 + $0x118] sm:$0xff]   ;;  %v2820_v3 = vpack.c.bf16 %v2801_v16, %v2800_v2  ;;  %v1604_v52 = vpack.c.bf16 %v1578_v63, %v1577_v54  ;;  %v1582_v2 = vld [vmem:[%s6592_s0 + $0xcb] sm:$0xff]  ;;  %v6497_v63 = vld [vmem:[%s6594_s2] ss:$0 sm:$0xff]  ;;  %s5294_s2 = smov [#allocation3]  }
 0x104   :  { %4823 = vmatprep.mubr.bf16.mxu0 %v2818_v59  ;;  %4893 = vmatpush3.bf16.msra.mxu1 %v5264_v60  ;;  %v3218_v59 = vpack.c.bf16 %v3194_v27, %v3193_v56  ;;  %v1605_v60 = vpack.c.bf16 %v1580_v11, %v1579_v58  ;;  %v3197_v16 = vld [vmem:[%s6592_s0 + $0xf6] sm:$0xff]  ;;  %v1606_v8 = vpack.c.bf16 %v1582_v2, %v1581_v13  ;;  %v6502_v58 = vld [vmem:[%s6595_s3] ss:$0 sm:$0xff]  ;;  %s3917_s3 = sshll.u32 %s5294_s2, 4  ;;  %s3918_s3 = int_to_ptr.vmem [resolvable:$true] %s3917_s3 }
 0x105   :  { %4886 = vmatprep.subr.bf16.mxu1 %v5265_v22  ;;  %s5270_s10 = scalar_lea.vmem %s3918_s3, 2304  ;;  %p5275_p1 = scmp.lt.s32.totalorder %s3918_s3, %s3918_s3 }
 0x106   :  { %p5271_p0 = scmp.ne.s32.totalorder %s3918_s3, %s5270_s10  ;;  %p5276_p2 = scmp.lt.s32.totalorder %s5270_s10, %s5270_s10 }
 0x108   :  { %4894 = vmatpush3.bf16.msra.mxu1 %v5265_v22  ;;  %v3198_v22 = vld [vmem:[%s6592_s0 + $0xfe] sm:$0xff]  ;;  %p5277_p3 = por %p5276_p2, %p5275_p1 }
 0x109   :  { %4887 = vmatprep.subr.bf16.mxu1 %v5266_v4 }
 0x10a   :  { %4596 = vmatmul.mubr.bf16.gmra.mrb[8].mxu1 %v6017_v24  ;;  %v3172_v24 = vld [vmem:[%s6592_s0 + $0x2e] sm:$0xff]  ;;  %p5278_p4 = pnand %p5277_p3, %p5271_p0 }
 0x10b   :  { %4824 = vmatmul.mubr.bf16.gmra.mrb[28].mxu0 %v2819_v25  ;;  %4599 = vmatprep.mubr.bf16.mxu1 %v6053_v37  ;;  %v5267_v37 = vld [vmem:[%s6593_s1 + $0x128] sm:$0xff]   ;;  %v3207_v12 = vpack.c.bf16 %v3172_v24, %v3171_v40  ;;  %v1583_v25 = vld [vmem:[%s6592_s0 + $0xd3] sm:$0xff]  ;;  %v3220_v40 = vpack.c.bf16 %v3198_v22, %v3197_v16 }
 0x10c   :  { %4827 = vmatprep.mubr.bf16.mxu0 %v2820_v3  ;;  %4895 = vmatpush3.bf16.msra.mxu1 %v5266_v4  ;;  %v1584_v3 = vld [vmem:[%s6592_s0 + $0xdb] sm:$0xff]  ;;  %v3199_v4 = vld [vmem:[%s6592_s0 + $0x106] sm:$0xff] }
 0x10d   :  { %4888 = vmatprep.subr.bf16.mxu1 %v5267_v37  ;;  %v1607_v24 = vpack.c.bf16 %v1584_v3, %v1583_v25 }
 0x110   :  { %4896 = vmatpush3.bf16.msra.mxu1 %v5267_v37  ;;  %v3221_v37 = vpack.c.bf16 %v3200_v5, %v3199_v4 }
 0x111   :  { %4889 = vmatprep.subr.bf16.mxu1 %v5268_v42 }
 0x112   :  { %4600 = vmatmul.mubr.bf16.gmra.mrb[12].mxu1 %v6055_v38  ;;  %v3176_v38 = vld [vmem:[%s6592_s0 + $0x4e] sm:$0xff] }
 0x113   :  { %4828 = vmatmul.mubr.bf16.gmra.mrb[32].mxu0 %v2821_v10  ;;  %4603 = vmatprep.mubr.bf16.mxu1 %v6086_v49  ;;  %v5269_v49 = vld [vmem:[%s6593_s1 + $0x138] sm:$0xff]   ;;  %v3209_v20 = vpack.c.bf16 %v3176_v38, %v3175_v19  ;;  %v1585_v10 = vld [vmem:[%s6592_s0 + $0xe3] sm:$0xff] }
 0x114   :  { %4847 = vmatprep.mubr.bf16.mxu0 %v3207_v12  ;;  %4897 = vmatpush3.bf16.msra.mxu1 %v5268_v42  ;;  %v1586_v12 = vld [vmem:[%s6592_s0 + $0xeb] sm:$0xff]  ;;  %v3201_v42 = vld [vmem:[%s6592_s0 + $0x116] sm:$0xff] }
 0x115   :  { %4890 = vmatprep.subr.bf16.mxu1 %v5269_v49  ;;  %v1588_v19 = vld [vmem:[%s6592_s0 + $0xfb] sm:$0xff]  ;;  %v3203_v38 = vld [vmem:[%s6592_s0 + $0x126] sm:$0xff] }
 0x116   :  { %v1609_v7 = vpack.c.bf16 %v1588_v19, %v1587_v17 }
 0x118   :  { %4898 = vmatpush3.bf16.msra.mxu1 %v5269_v49  ;;  %v3204_v49 = vld [vmem:[%s6592_s0 + $0x12e] sm:$0xff] }
 0x119   :  { %v3223_v26 = vpack.c.bf16 %v3204_v49, %v3203_v38 }
 0x11a   :  { %4604 = vmatmul.mubr.bf16.gmra.mrb[16].mxu1 %v6088_v32  ;;  %v3180_v32 = vld [vmem:[%s6592_s0 + $0x6e] sm:$0xff] }
 0x11b   :  { %4848 = vmatmul.mubr.bf16.vlgmr.msra.gmra.mrb[0].mxu0 %v3208_v57  ;;  %4607 = vmatprep.mubr.bf16.mxu1 %v6129_v0  ;;  %v3211_v9 = vpack.c.bf16 %v3180_v32, %v3179_v28  ;;  %v3181_v0 = vld [vmem:[%s6592_s0 + $0x76] sm:$0xff]  ;;  %v1608_v57 = vpack.c.bf16 %v1586_v12, %v1585_v10  ;;  %v1589_v28 = vld [vmem:[%s6592_s0 + $0x103] sm:$0xff]  ;;  %v1590_v32 = vld [vmem:[%s6592_s0 + $0x10b] sm:$0xff] }
 0x11c   :  { %4851 = vmatprep.mubr.bf16.mxu0 %v3209_v20  ;;  %v3212_v34 = vpack.c.bf16 %v3182_v30, %v3181_v0  ;;  %v3222_v20 = vpack.c.bf16 %v3202_v14, %v3201_v42  ;;  %v1591_v0 = vld [vmem:[%s6592_s0 + $0x113] sm:$0xff]  ;;  %v1592_v30 = vld [vmem:[%s6592_s0 + $0x11b] sm:$0xff] }
 0x122   :  { %4608 = vmatmul.mubr.bf16.gmra.mrb[20].mxu1 %v6131_v1  ;;  %v3184_v1 = vld [vmem:[%s6592_s0 + $0x8e] sm:$0xff] }
 0x123   :  { %4852 = vmatmul.mubr.bf16.gmra.mrb[4].mxu0 %v3210_v29  ;;  %4611 = vmatprep.mubr.bf16.mxu1 %v6165_v55  ;;  %v3213_v36 = vpack.c.bf16 %v3184_v1, %v3183_v31  ;;  %v3185_v55 = vld [vmem:[%s6592_s0 + $0x96] sm:$0xff]  ;;  %v1610_v31 = vpack.c.bf16 %v1590_v32, %v1589_v28 }
 0x124   :  { %4855 = vmatprep.mubr.bf16.mxu0 %v3211_v9  ;;  %v3214_v41 = vpack.c.bf16 %v3186_v39, %v3185_v55  ;;  %v3205_v29 = vld [vmem:[%s6592_s0 + $0x136] sm:$0xff]  ;;  %v3206_v9 = vld [vmem:[%s6592_s0 + $0x13e] sm:$0xff]  ;;  %v1594_v55 = vld [vmem:[%s6592_s0 + $0x12b] sm:$0xff] }
 0x125   :  { %v3224_v1 = vpack.c.bf16 %v3206_v9, %v3205_v29 }
 0x12a   :  { %4612 = vmatmul.mubr.bf16.gmra.mrb[24].mxu1 %v6167_v18  ;;  %v3188_v18 = vld [vmem:[%s6592_s0 + $0xae] sm:$0xff] }
 0x12b   :  { %4856 = vmatmul.mubr.bf16.gmra.mrb[8].mxu0 %v3212_v34  ;;  %4615 = vmatprep.mubr.bf16.mxu1 %v6201_v21  ;;  %v3215_v43 = vpack.c.bf16 %v3188_v18, %v3187_v35  ;;  %v1190_v21 = vld [vmem:[%s6592_s0 + $0x122] sm:$0xff]  ;;  %v1611_v34 = vpack.c.bf16 %v1592_v30, %v1591_v0 }
 0x12c   :  { %4859 = vmatprep.mubr.bf16.mxu0 %v3213_v36  ;;  %v1209_v50 = vpack.c.bf16 %v1191_v44, %v1190_v21  ;;  %v1593_v36 = vld [vmem:[%s6592_s0 + $0x123] sm:$0xff] }
 0x12d   :  { %v1612_v39 = vpack.c.bf16 %v1594_v55, %v1593_v36 }
 0x132   :  { %4616 = vmatmul.mubr.bf16.gmra.mrb[28].mxu1 %v6203_v33  ;;  %v3190_v33 = vld [vmem:[%s6592_s0 + $0xbe] sm:$0xff] }
 0x133   :  { %4860 = vmatmul.mubr.bf16.gmra.mrb[12].mxu0 %v3214_v41  ;;  %4619 = vmatprep.mubr.bf16.mxu1 %v6228_v46  ;;  %v3191_v46 = vld [vmem:[%s6592_s0 + $0xc6] sm:$0xff]  ;;  %v3216_v61 = vpack.c.bf16 %v3190_v33, %v3189_v47 }
 0x134   :  { %4863 = vmatprep.mubr.bf16.mxu0 %v3215_v43  ;;  %v3217_v53 = vpack.c.bf16 %v3192_v48, %v3191_v46 }
 0x13a   :  { %4620 = vmatmul.mubr.bf16.gmra.mrb[32].mxu1 %v1209_v50 }
 0x13b   :  { %4864 = vmatmul.mubr.bf16.gmra.mrb[16].mxu0 %v3216_v61  ;;  %4655 = vmatprep.mubr.bf16.mxu1 %v1603_v51 }
 0x13c   :  { %4867 = vmatprep.mubr.bf16.mxu0 %v3217_v53 }
 0x142   :  { %4656 = vmatmul.mubr.bf16.vlgmr.msra.gmra.mrb[16].mxu1 %v1604_v52 }
 0x143   :  { %4868 = vmatmul.mubr.bf16.gmra.mrb[20].mxu0 %v3218_v59  ;;  %4659 = vmatprep.mubr.bf16.mxu1 %v1605_v60 }
 0x144   :  { %4871 = vmatprep.mubr.bf16.mxu0 %v3219_v62 }
 0x14a   :  { %4660 = vmatmul.mubr.bf16.gmra.mrb[20].mxu1 %v1606_v8 }
 0x14b   :  { %4872 = vmatmul.mubr.bf16.gmra.mrb[24].mxu0 %v3220_v40  ;;  %4663 = vmatprep.mubr.bf16.mxu1 %v1607_v24 }
 0x14c   :  { %4875 = vmatprep.mubr.bf16.mxu0 %v3221_v37 }
 0x152   :  { %4664 = vmatmul.mubr.bf16.gmra.mrb[24].mxu1 %v1608_v57 }
 0x153   :  { %4876 = vmatmul.mubr.bf16.gmra.mrb[28].mxu0 %v3222_v20  ;;  %4667 = vmatprep.mubr.bf16.mxu1 %v1609_v7 }
 0x154   :  { %4879 = vmatprep.mubr.bf16.mxu0 %v3223_v26 }
 0x15a   :  { %4668 = vmatmul.mubr.bf16.gmra.mrb[28].mxu1 %v1610_v31 }
 0x15b   :  { %4880 = vmatmul.mubr.bf16.gmra.mrb[32].mxu0 %v3224_v1  ;;  %4671 = vmatprep.mubr.bf16.mxu1 %v1611_v34 }
 0x162   :  { %4672 = vmatmul.mubr.bf16.gmra.mrb[32].mxu1 %v1612_v39 }
 0x1cd   :  { %v4589_v35 = vpop.f32.mrb[0].mxu1 }
 0x1ce   :  { %v1308_v18 = vpop.f32.mrb[1].mxu1 }
 0x1cf   :  { %v4590_v41 = vpop.f32.mrb[2].mxu1 }
 0x1d0   :  { %v1311_v43 = vpop.f32.mrb[3].mxu1 }
 0x1d5   :  { %v4593_v21 = vpop.f32.mrb[4].mxu1 }
 0x1d6   :  { %v1324_v44 = vpop.f32.mrb[5].mxu1 }
 0x1d7   :  { %v4594_v47 = vpop.f32.mrb[6].mxu1 }
 0x1d8   :  { %v1327_v33 = vpop.f32.mrb[7].mxu1 }
 0x1dd   :  { %v4597_v23 = vpop.f32.mrb[8].mxu1 }
 0x1de   :  { %v1340_v45 = vpop.f32.mrb[9].mxu1 }
 0x1df   :  { %v4598_v46 = vpop.f32.mrb[10].mxu1 }
 0x1e0   :  { %v1343_v48 = vpop.f32.mrb[11].mxu1 }
 0x1e5   :  { %v6486_v50 = vpop.f32.mrb[12].mxu1 }
 0x1e6   :  { %v6488_v61 = vpop.f32.mrb[13].mxu1 }
 0x1e7   :  { %v6490_v51 = vpop.f32.mrb[14].mxu1 }
 0x1e8   :  { %v6492_v53 = vpop.f32.mrb[15].mxu1 }
 0x1ee   :  { %v4849_v54 = vpop.f32.mrb[0].mxu0 }
 0x1ef   :  { %v4899_v56 = vadd.f32 %v4849_v54, %v4589_v35  ;;  %v3323_v27 = vpop.f32.mrb[1].mxu0 }
 0x1f0   :  { %v4900_v11 = vadd.f32 %v3323_v27, %v1308_v18  ;;  %v4850_v6 = vpop.f32.mrb[2].mxu0 }
 0x1f1   :  { %v3619_v15 = vmul.f32 %v4899_v56, %v6497_v63  ;;  %v4901_v52 = vadd.f32 %v4850_v6, %v4590_v41  ;;  %v3326_v59 = vpop.f32.mrb[3].mxu0 }
 0x1f2   :  { %v3617_v60 = vmul.f32 %v4900_v11, %v6497_v63  ;;  %v4902_v62 = vadd.f32 %v3326_v59, %v1311_v43 }
 0x1f3   :  { %v3662_v13 = vadd.f32 %v6502_v58, %v3619_v15  ;;  %v3620_v2 = vmul.f32 %v4901_v52, %v6497_v63 }
 0x1f4   :  { %v3660_v16 = vadd.f32 %v6502_v58, %v3617_v60  ;;  %v3618_v22 = vmul.f32 %v4902_v62, %v6497_v63 }
 0x1f5   :  { %v3663_v25 = vadd.f32 %v6502_v58, %v3620_v2  ;;  %v3698_v5 = vmax.f32 %v3662_v13, 0.0 }
 0x1f6   :  { %v3661_v3 = vadd.f32 %v6502_v58, %v3618_v22  ;;  %v4853_v4 = vpop.f32.mrb[4].mxu0  ;;  %v3696_v37 = vmax.f32 %v3660_v16, 0.0 }
 0x1f7   :  { %v3699_v8 = vmax.f32 %v3663_v25, 0.0  ;;  %v4903_v40 = vadd.f32 %v4853_v4, %v4593_v21  ;;  %v3339_v24 = vpop.f32.mrb[5].mxu0 }
 0x1f8   :  { %v3697_v10 = vmax.f32 %v3661_v3, 0.0  ;;  %v4904_v12 = vadd.f32 %v3339_v24, %v1324_v44  ;;  %v4854_v42 = vpop.f32.mrb[6].mxu0 }
 0x1f9   :  { %v4082_v14 = vpack.c.bf16 %v3699_v8, %v3698_v5  ;;  %v3623_v17 = vmul.f32 %v4903_v40, %v6497_v63  ;;  %v4905_v19 = vadd.f32 %v4854_v42, %v4594_v47  ;;  %v3342_v38 = vpop.f32.mrb[7].mxu0 }
 0x1fa   :  { %v4077_v49 = vpack.c.bf16 %v3697_v10, %v3696_v37  ;;  %v3621_v57 = vmul.f32 %v4904_v12, %v6497_v63  ;;  %v4906_v20 = vadd.f32 %v3342_v38, %v1327_v33 }
 0x1fb   :  { %4164 = vst [vmem:[#allocation3 + $0x8] sm:$0xff] %v4082_v14   ;;  %v3666_v7 = vadd.f32 %v6502_v58, %v3623_v17  ;;  %v3624_v26 = vmul.f32 %v4905_v19, %v6497_v63 }
 0x1fc   :  { %4078 = vst [vmem:[#allocation3] sm:$0xff] %v4077_v49   ;;  %v3664_v28 = vadd.f32 %v6502_v58, %v3621_v57  ;;  %v3622_v32 = vmul.f32 %v4906_v20, %v6497_v63 }
 0x1fd   :  { %v3667_v29 = vadd.f32 %v6502_v58, %v3624_v26  ;;  %v3702_v30 = vmax.f32 %v3666_v7, 0.0 }
 0x1fe   :  { %v3665_v9 = vadd.f32 %v6502_v58, %v3622_v32  ;;  %v4857_v0 = vpop.f32.mrb[8].mxu0  ;;  %v3700_v36 = vmax.f32 %v3664_v28, 0.0 }
 0x1ff   :  { %v3703_v31 = vmax.f32 %v3667_v29, 0.0  ;;  %v4907_v1 = vadd.f32 %v4857_v0, %v4597_v23  ;;  %v3355_v34 = vpop.f32.mrb[9].mxu0 }
 0x200   :  { %v3701_v55 = vmax.f32 %v3665_v9, 0.0  ;;  %v4908_v39 = vadd.f32 %v3355_v34, %v1340_v45  ;;  %v4858_v35 = vpop.f32.mrb[10].mxu0 }
 0x201   :  { %v4092_v18 = vpack.c.bf16 %v3703_v31, %v3702_v30  ;;  %v3627_v41 = vmul.f32 %v4907_v1, %v6497_v63  ;;  %v4909_v43 = vadd.f32 %v4858_v35, %v4598_v46  ;;  %v3358_v21 = vpop.f32.mrb[11].mxu0 }
 0x202   :  { %v4087_v44 = vpack.c.bf16 %v3701_v55, %v3700_v36  ;;  %v3625_v47 = vmul.f32 %v4908_v39, %v6497_v63  ;;  %v4910_v33 = vadd.f32 %v3358_v21, %v1343_v48 }
 0x203   :  { %4166 = vst [vmem:[#allocation3 + $0x18] sm:$0xff] %v4092_v18   ;;  %v3670_v54 = vadd.f32 %v6502_v58, %v3627_v41  ;;  %v3628_v56 = vmul.f32 %v4909_v43, %v6497_v63 }
 0x204   :  { %4165 = vst [vmem:[#allocation3 + $0x10] sm:$0xff] %v4087_v44   ;;  %v3668_v23 = vadd.f32 %v6502_v58, %v3625_v47  ;;  %v3626_v45 = vmul.f32 %v4910_v33, %v6497_v63 }
 0x205   :  { %v3671_v27 = vadd.f32 %v6502_v58, %v3628_v56  ;;  %v3706_v6 = vmax.f32 %v3670_v54, 0.0 }
 0x206   :  { %v3669_v11 = vadd.f32 %v6502_v58, %v3626_v45  ;;  %v4861_v46 = vpop.f32.mrb[12].mxu0  ;;  %v3704_v59 = vmax.f32 %v3668_v23, 0.0 }
 0x207   :  { %v3707_v15 = vmax.f32 %v3671_v27, 0.0  ;;  %v4911_v52 = vadd.f32 %v4861_v46, %v6486_v50  ;;  %v3371_v48 = vpop.f32.mrb[13].mxu0 }
 0x208   :  { %v3705_v60 = vmax.f32 %v3669_v11, 0.0  ;;  %v4912_v62 = vadd.f32 %v3371_v48, %v6488_v61  ;;  %v4862_v13 = vpop.f32.mrb[14].mxu0 }
 0x209   :  { %v4102_v2 = vpack.c.bf16 %v3707_v15, %v3706_v6  ;;  %v3631_v16 = vmul.f32 %v4911_v52, %v6497_v63  ;;  %v4913_v22 = vadd.f32 %v4862_v13, %v6490_v51  ;;  %v3374_v25 = vpop.f32.mrb[15].mxu0 }
 0x20a   :  { %v4097_v3 = vpack.c.bf16 %v3705_v60, %v3704_v59  ;;  %v3629_v4 = vmul.f32 %v4912_v62, %v6497_v63  ;;  %v4914_v5 = vadd.f32 %v3374_v25, %v6492_v53 }
 0x20b   :  { %4168 = vst [vmem:[#allocation3 + $0x28] sm:$0xff] %v4102_v2   ;;  %v3674_v50 = vadd.f32 %v6502_v58, %v3631_v16  ;;  %v3632_v8 = vmul.f32 %v4913_v22, %v6497_v63 }
 0x20c   :  { %4167 = vst [vmem:[#allocation3 + $0x20] sm:$0xff] %v4097_v3   ;;  %v3672_v61 = vadd.f32 %v6502_v58, %v3629_v4  ;;  %v3630_v40 = vmul.f32 %v4914_v5, %v6497_v63 }
 0x20d   :  { %v3675_v24 = vadd.f32 %v6502_v58, %v3632_v8  ;;  %v3710_v10 = vmax.f32 %v3674_v50, 0.0 }
 0x20e   :  { %v3673_v51 = vadd.f32 %v6502_v58, %v3630_v40  ;;  %v4865_v37 = vpop.f32.mrb[16].mxu0  ;;  %v3708_v14 = vmax.f32 %v3672_v61, 0.0 }
 0x20f   :  { %v3711_v12 = vmax.f32 %v3675_v24, 0.0  ;;  %v3387_v42 = vpop.f32.mrb[17].mxu0 }
 0x210   :  { %v3709_v53 = vmax.f32 %v3673_v51, 0.0  ;;  %v4866_v17 = vpop.f32.mrb[18].mxu0 }
 0x211   :  { %v4112_v19 = vpack.c.bf16 %v3711_v12, %v3710_v10  ;;  %v3390_v38 = vpop.f32.mrb[19].mxu0 }
 0x212   :  { %v4107_v49 = vpack.c.bf16 %v3709_v53, %v3708_v14 }
 0x213   :  { %4170 = vst [vmem:[#allocation3 + $0x38] sm:$0xff] %v4112_v19  }
 0x214   :  { %4169 = vst [vmem:[#allocation3 + $0x30] sm:$0xff] %v4107_v49  }
 0x215   :  { %v4657_v57 = vpop.f32.mrb[16].mxu1 }
 0x216   :  { %v4915_v20 = vadd.f32 %v4865_v37, %v4657_v57  ;;  %v4869_v7 = vpop.f32.mrb[20].mxu0  ;;  %v1775_v26 = vpop.f32.mrb[17].mxu1 }
 0x217   :  { %v4916_v28 = vadd.f32 %v3387_v42, %v1775_v26  ;;  %v3403_v32 = vpop.f32.mrb[21].mxu0  ;;  %v4658_v29 = vpop.f32.mrb[18].mxu1 }
 0x218   :  { %v3635_v9 = vmul.f32 %v4915_v20, %v6497_v63  ;;  %v4917_v0 = vadd.f32 %v4866_v17, %v4658_v29  ;;  %v4870_v30 = vpop.f32.mrb[22].mxu0  ;;  %v1778_v31 = vpop.f32.mrb[19].mxu1 }
 0x219   :  { %v3633_v1 = vmul.f32 %v4916_v28, %v6497_v63  ;;  %v4918_v34 = vadd.f32 %v3390_v38, %v1778_v31  ;;  %v3406_v36 = vpop.f32.mrb[23].mxu0 }
 0x21a   :  { %v3678_v55 = vadd.f32 %v6502_v58, %v3635_v9  ;;  %v3636_v39 = vmul.f32 %v4917_v0, %v6497_v63 }
 0x21b   :  { %v3676_v35 = vadd.f32 %v6502_v58, %v3633_v1  ;;  %v3634_v18 = vmul.f32 %v4918_v34, %v6497_v63 }
 0x21c   :  { %v3679_v41 = vadd.f32 %v6502_v58, %v3636_v39  ;;  %v3714_v44 = vmax.f32 %v3678_v55, 0.0 }
 0x21d   :  { %v3677_v43 = vadd.f32 %v6502_v58, %v3634_v18  ;;  %v4661_v21 = vpop.f32.mrb[20].mxu1  ;;  %v3712_v23 = vmax.f32 %v3676_v35, 0.0 }
 0x21e   :  { %v3715_v47 = vmax.f32 %v3679_v41, 0.0  ;;  %v4919_v33 = vadd.f32 %v4869_v7, %v4661_v21  ;;  %v4873_v54 = vpop.f32.mrb[24].mxu0  ;;  %v1791_v56 = vpop.f32.mrb[21].mxu1 }
 0x21f   :  { %v3713_v45 = vmax.f32 %v3677_v43, 0.0  ;;  %v4920_v27 = vadd.f32 %v3403_v32, %v1791_v56  ;;  %v3419_v11 = vpop.f32.mrb[25].mxu0  ;;  %v4662_v46 = vpop.f32.mrb[22].mxu1 }
 0x220   :  { %v4122_v6 = vpack.c.bf16 %v3715_v47, %v3714_v44  ;;  %v3639_v15 = vmul.f32 %v4919_v33, %v6497_v63  ;;  %v4921_v52 = vadd.f32 %v4870_v30, %v4662_v46  ;;  %v4874_v48 = vpop.f32.mrb[26].mxu0  ;;  %v1794_v59 = vpop.f32.mrb[23].mxu1 }
 0x221   :  { %v4117_v60 = vpack.c.bf16 %v3713_v45, %v3712_v23  ;;  %v3637_v62 = vmul.f32 %v4920_v27, %v6497_v63  ;;  %v4922_v13 = vadd.f32 %v3406_v36, %v1794_v59  ;;  %v3422_v2 = vpop.f32.mrb[27].mxu0 }
 0x222   :  { %4172 = vst [vmem:[#allocation3 + $0x48] sm:$0xff] %v4122_v6   ;;  %v3682_v16 = vadd.f32 %v6502_v58, %v3639_v15  ;;  %v3640_v22 = vmul.f32 %v4921_v52, %v6497_v63 }
 0x223   :  { %4171 = vst [vmem:[#allocation3 + $0x40] sm:$0xff] %v4117_v60   ;;  %v3680_v25 = vadd.f32 %v6502_v58, %v3637_v62  ;;  %v3638_v3 = vmul.f32 %v4922_v13, %v6497_v63 }
 0x224   :  { %v3683_v4 = vadd.f32 %v6502_v58, %v3640_v22  ;;  %v3718_v8 = vmax.f32 %v3682_v16, 0.0 }
 0x225   :  { %v3681_v5 = vadd.f32 %v6502_v58, %v3638_v3  ;;  %v4665_v50 = vpop.f32.mrb[24].mxu1  ;;  %v3716_v37 = vmax.f32 %v3680_v25, 0.0 }
 0x226   :  { %v3719_v61 = vmax.f32 %v3683_v4, 0.0  ;;  %v4923_v40 = vadd.f32 %v4873_v54, %v4665_v50  ;;  %v4877_v24 = vpop.f32.mrb[28].mxu0  ;;  %v1807_v51 = vpop.f32.mrb[25].mxu1 }
 0x227   :  { %v3717_v10 = vmax.f32 %v3681_v5, 0.0  ;;  %v4924_v12 = vadd.f32 %v3419_v11, %v1807_v51  ;;  %v3435_v42 = vpop.f32.mrb[29].mxu0  ;;  %v4666_v14 = vpop.f32.mrb[26].mxu1 }
 0x228   :  { %v4132_v53 = vpack.c.bf16 %v3719_v61, %v3718_v8  ;;  %v3643_v17 = vmul.f32 %v4923_v40, %v6497_v63  ;;  %v4925_v19 = vadd.f32 %v4874_v48, %v4666_v14  ;;  %v4878_v38 = vpop.f32.mrb[30].mxu0  ;;  %v1810_v49 = vpop.f32.mrb[27].mxu1 }
 0x229   :  { %v4127_v57 = vpack.c.bf16 %v3717_v10, %v3716_v37  ;;  %v3641_v20 = vmul.f32 %v4924_v12, %v6497_v63  ;;  %v4926_v7 = vadd.f32 %v3422_v2, %v1810_v49  ;;  %v3438_v26 = vpop.f32.mrb[31].mxu0 }
 0x22a   :  { %4174 = vst [vmem:[#allocation3 + $0x58] sm:$0xff] %v4132_v53   ;;  %v3686_v28 = vadd.f32 %v6502_v58, %v3643_v17  ;;  %v3644_v32 = vmul.f32 %v4925_v19, %v6497_v63 }
 0x22b   :  { %4173 = vst [vmem:[#allocation3 + $0x50] sm:$0xff] %v4127_v57   ;;  %v3684_v29 = vadd.f32 %v6502_v58, %v3641_v20  ;;  %v3642_v9 = vmul.f32 %v4926_v7, %v6497_v63 }
 0x22c   :  { %v3687_v0 = vadd.f32 %v6502_v58, %v3644_v32  ;;  %v3722_v1 = vmax.f32 %v3686_v28, 0.0 }
 0x22d   :  { %v3685_v30 = vadd.f32 %v6502_v58, %v3642_v9  ;;  %v4669_v31 = vpop.f32.mrb[28].mxu1  ;;  %v3720_v35 = vmax.f32 %v3684_v29, 0.0 }
 0x22e   :  { %v3723_v34 = vmax.f32 %v3687_v0, 0.0  ;;  %v4927_v36 = vadd.f32 %v4877_v24, %v4669_v31  ;;  %v4881_v55 = vpop.f32.mrb[32].mxu0  ;;  %v1823_v39 = vpop.f32.mrb[29].mxu1 }
 0x22f   :  { %v3721_v18 = vmax.f32 %v3685_v30, 0.0  ;;  %v4928_v41 = vadd.f32 %v3435_v42, %v1823_v39  ;;  %v3451_v43 = vpop.f32.mrb[33].mxu0  ;;  %v4670_v21 = vpop.f32.mrb[30].mxu1 }
 0x230   :  { %v4142_v44 = vpack.c.bf16 %v3723_v34, %v3722_v1  ;;  %v3647_v47 = vmul.f32 %v4927_v36, %v6497_v63  ;;  %v4929_v33 = vadd.f32 %v4878_v38, %v4670_v21  ;;  %v4882_v54 = vpop.f32.mrb[34].mxu0  ;;  %v1826_v56 = vpop.f32.mrb[31].mxu1 }
 0x231   :  { %v4137_v23 = vpack.c.bf16 %v3721_v18, %v3720_v35  ;;  %v3645_v45 = vmul.f32 %v4928_v41, %v6497_v63  ;;  %v4930_v27 = vadd.f32 %v3438_v26, %v1826_v56  ;;  %v3454_v11 = vpop.f32.mrb[35].mxu0 }
 0x232   :  { %4176 = vst [vmem:[#allocation3 + $0x68] sm:$0xff] %v4142_v44   ;;  %v3690_v46 = vadd.f32 %v6502_v58, %v3647_v47  ;;  %v3648_v6 = vmul.f32 %v4929_v33, %v6497_v63 }
 0x233   :  { %4175 = vst [vmem:[#allocation3 + $0x60] sm:$0xff] %v4137_v23   ;;  %v3688_v15 = vadd.f32 %v6502_v58, %v3645_v45  ;;  %v3646_v52 = vmul.f32 %v4930_v27, %v6497_v63 }
 0x234   :  { %v3691_v48 = vadd.f32 %v6502_v58, %v3648_v6  ;;  %v3726_v62 = vmax.f32 %v3690_v46, 0.0 }
 0x235   :  { %v3689_v59 = vadd.f32 %v6502_v58, %v3646_v52  ;;  %v4673_v60 = vpop.f32.mrb[32].mxu1  ;;  %v3724_v22 = vmax.f32 %v3688_v15, 0.0 }
 0x236   :  { %v3727_v13 = vmax.f32 %v3691_v48, 0.0  ;;  %v4931_v2 = vadd.f32 %v4881_v55, %v4673_v60  ;;  %v1839_v16 = vpop.f32.mrb[33].mxu1 }
 0x237   :  { %v3725_v25 = vmax.f32 %v3689_v59, 0.0  ;;  %v4932_v3 = vadd.f32 %v3451_v43, %v1839_v16  ;;  %v4674_v4 = vpop.f32.mrb[34].mxu1 }
 0x238   :  { %v4152_v5 = vpack.c.bf16 %v3727_v13, %v3726_v62  ;;  %v3651_v50 = vmul.f32 %v4931_v2, %v6497_v63  ;;  %v4933_v8 = vadd.f32 %v4882_v54, %v4674_v4  ;;  %v1842_v61 = vpop.f32.mrb[35].mxu1 }
 0x239   :  { %v4147_v40 = vpack.c.bf16 %v3725_v25, %v3724_v22  ;;  %v3649_v24 = vmul.f32 %v4932_v3, %v6497_v63  ;;  %v4934_v51 = vadd.f32 %v3454_v11, %v1842_v61 }
 0x23a   :  { %4178 = vst [vmem:[#allocation3 + $0x78] sm:$0xff] %v4152_v5   ;;  %v3694_v37 = vadd.f32 %v6502_v58, %v3651_v50  ;;  %v3652_v10 = vmul.f32 %v4933_v8, %v6497_v63 }
 0x23b   :  { %4177 = vst [vmem:[#allocation3 + $0x70] sm:$0xff] %v4147_v40   ;;  %v3692_v12 = vadd.f32 %v6502_v58, %v3649_v24  ;;  %v3650_v42 = vmul.f32 %v4934_v51, %v6497_v63 }
 0x23c   :  { %v3695_v14 = vadd.f32 %v6502_v58, %v3652_v10  ;;  %v3730_v17 = vmax.f32 %v3694_v37, 0.0 }
 0x23d   :  { %v3693_v53 = vadd.f32 %v6502_v58, %v3650_v42  ;;  %v3728_v38 = vmax.f32 %v3692_v12, 0.0 }
 0x23e   :  { %v3731_v19 = vmax.f32 %v3695_v14, 0.0 }
 0x23f   :  { %v3729_v49 = vmax.f32 %v3693_v53, 0.0 }
 0x240   :  { %v4162_v57 = vpack.c.bf16 %v3731_v19, %v3730_v17 }
 0x241   :  { %v4157_v20 = vpack.c.bf16 %v3729_v49, %v3728_v38 }
 0x242   :  { %4180 = vst [vmem:[#allocation3 + $0x88] sm:$0xff] %v4162_v57  }
 0x243   :  { %4179 = vst [vmem:[#allocation3 + $0x80] sm:$0xff] %v4157_v20  }
 0x244   :  { %5281 = shalt.err (!%p5278_p4)
}
 0x245   :  { %s5282_s13 = scalar_lea.hbm %s6596_s4, 2304 }
 0x246   :  { %p5283_p5 = scmp.ne.s32.totalorder %s6596_s4, %s5282_s13  ;;  %p5286_p6 = scmp.lt.u32.totalorder %s5282_s13, %s6596_s4 }
 0x248   :  { %p5288_p7 = pnand %p5286_p6, %p5283_p5 }
 0x24a   :  { %5291 = shalt.err (!%p5288_p7)
}
 0x24b   :  { %s5295_s17 = smov 64   ;;  %s5296_s18 = smov 4  }
 0x24c   :  { %3923 = dma.vmem_to_hbm [thread:$0]  %s3918_s3, 2304, %s6596_s4, [#allocation4], %s5295_s17, %s5295_s17, %s5296_s18  }
 0x24d   :  { %5292 = dma.done.wait [#allocation4], 2304  }
 0x24e   :  { %5293 = vsyncadd [#allocation4], 4294964992 }
 0x24f   :  { %3927 = vsyncpa [#allocation4], 1 }

</bundles_post_ra>
